<compile_context>
chip_gen: v6e
topology: v6e:2x2x1
jax: 0.10.0
libtpu: 0.0.40
codegen_flags: <defaults>
</compile_context>

<pallas_src>
import functools

import jax
import jax.numpy as jnp
import numpy as np
from jax import lax
from jax.experimental import pallas as pl
from jax.experimental.pallas import tpu as pltpu


def _basic_block_kernel(x_ref, xtop_ref, xbot_ref, wdw_ref, wpw_ref, b1_ref, b2_ref,
                        o_ref, xpad_ref, *, stride):
    # x_ref:    (1, BH, W, Cin)   bf16 center rows of this tile (BH = TILE_H * stride)
    # xtop_ref: (1, 1, W, Cin)    bf16 halo row above the tile (clamped at image top)
    # xbot_ref: (1, 1, W, Cin)    bf16 halo row below the tile (clamped at image bottom)
    # wdw_ref:  (9, Cin)          f32 depthwise 3x3 weights * BN1 scale, taps flattened
    # wpw_ref:  (Cin, Cout)       bf16 pointwise 1x1 weights * BN2 scale
    # b*_ref:   (1, C)            f32 folded BatchNorm biases
    # o_ref:    (1, TILE_H, Wo, Cout)  bf16 output row tile
    # xpad_ref: (BH+2, W+2, Cin)  bf16 tile-local zero-padded scratch
    j = pl.program_id(1)
    nj = pl.num_programs(1)
    _, bh, w, cin = x_ref.shape
    _, th, wo, cout = o_ref.shape

    # --- build the zero-padded tile in VMEM (halo rows + border-only zeroing) ---
    col_zeros = jnp.zeros((bh + 2, 1, cin), xpad_ref.dtype)
    xpad_ref[:, pl.ds(0, 1), :] = col_zeros          # left border (covers corners too)
    xpad_ref[:, pl.ds(w + 1, 1), :] = col_zeros      # right border
    xpad_ref[pl.ds(1, bh), pl.ds(1, w), :] = x_ref[0]        # interior rows
    xpad_ref[pl.ds(0, 1), pl.ds(1, w), :] = xtop_ref[0]      # halo row above
    xpad_ref[pl.ds(bh + 1, 1), pl.ds(1, w), :] = xbot_ref[0] # halo row below

    row_zeros = jnp.zeros((1, w, cin), xpad_ref.dtype)

    @pl.when(j == 0)                                 # first tile: top halo is zero pad
    def _():
        xpad_ref[pl.ds(0, 1), pl.ds(1, w), :] = row_zeros

    @pl.when(j == nj - 1)                            # last tile: bottom halo is zero pad
    def _():
        xpad_ref[pl.ds(bh + 1, 1), pl.ds(1, w), :] = row_zeros

    # --- depthwise 3x3 conv (VPU), bf16 loads, f32 accumulation; BN1 scale pre-folded ---
    wdw = wdw_ref[...]                               # (9, Cin) f32, one load for all taps
    acc = jnp.zeros((th, wo, cin), jnp.float32)
    for kh in range(3):
        for kw in range(3):
            if stride == 1:
                patch = xpad_ref[pl.ds(kh, th), pl.ds(kw, wo), :]
            else:
                patch = xpad_ref[pl.ds(kh, th, stride), pl.ds(kw, wo, stride), :]
            acc = acc + patch.astype(jnp.float32) * wdw[3 * kh + kw]

    # --- BN1 bias + ReLU (scale already folded into wdw) ---
    y = jnp.maximum(acc + b1_ref[0], 0.0).astype(jnp.bfloat16)

    # --- pointwise 1x1 conv == channel matmul on the MXU (bf16 operands, f32 acc) ---
    y2 = jnp.dot(y.reshape(th * wo, cin), wpw_ref[...],
                 preferred_element_type=jnp.float32)

    # --- BN2 bias + ReLU (scale already folded into wpw) ---
    y2 = jnp.maximum(y2 + b2_ref[0], 0.0)
    o_ref[0] = y2.reshape(th, wo, cout).astype(o_ref.dtype)


def _pick_row_tile(h, w, ho, wo, cin, cout, stride):
    """Largest sublane-friendly row tile that tiles both the output height (th | ho) and
    the input height (th*stride | h), gives the pipeline >= 2 steps, and keeps the
    per-step VMEM working set within budget."""
    budget = 8 * 1024 * 1024
    for th in (256, 128, 64, 32, 16, 8):
        if ho % th or ho // th < 2 or h % (th * stride):
            continue
        bh = th * stride
        step_bytes = (2 * bh * w * cin * 2              # center block (bf16, 2-buffered)
                      + (bh + 2) * (w + 2) * cin * 2    # padded scratch (bf16)
                      + 2 * th * wo * cout * 2          # output block (bf16, 2-buffered)
                      + th * wo * (cin + cout) * 4)     # f32 intermediates
        if step_bytes <= budget:
            return th
    return ho  # single tile over the full height (generic-shape fallback)


def basic_block_forward_nhwc(x_nhwc, params, stride=1):
    """BasicBlock forward on NHWC activations (bf16 in/out of the kernel)."""
    wdw, wpw, s1, b1, s2, b2 = params
    x = x_nhwc.astype(jnp.bfloat16)   # in a real net the previous layer emits bf16 NHWC
    n, h, w, cin = x.shape
    cout = wpw.shape[1]
    ho = (h - 1) // stride + 1
    wo = (w - 1) // stride + 1

    th = _pick_row_tile(h, w, ho, wo, cin, cout, stride)
    block_h = th * stride if h % (th * stride) == 0 else h
    nj = ho // th

    # Fold BN scales into the conv weights (inference mode); only biases stay in-kernel.
    wdw9 = (wdw * s1[0]).reshape(9, cin).astype(jnp.float32)   # taps flattened kh*3+kw
    wpw_f = (wpw * s2[0]).astype(jnp.bfloat16)                 # MXU operand in bf16
    b1f = b1.astype(jnp.float32)
    b2f = b2.astype(jnp.float32)

    kernel = functools.partial(_basic_block_kernel, stride=stride)

    flops = 2 * n * ho * wo * cin * (9 + cout)
    bytes_accessed = (n * h * w * cin * 2 + n * ho * wo * cout * 2
                      + wdw9.size * 4 + wpw_f.size * 2 + (cin + cout) * 4)

    # VMEM cap derived from the actual per-step footprint (tile-scaled), clamped so it
    # stays well under v7x's 64 MiB physical VMEM while leaving compiler headroom.
    step_bytes = (2 * block_h * w * cin * 2 + 4 * w * cin * 2
                  + (block_h + 2) * (w + 2) * cin * 2
                  + 2 * th * wo * cout * 2
                  + th * wo * (cin + cout) * 4
                  + 2 * (wdw9.size * 4 + wpw_f.size * 2 + (cin + cout) * 4))
    vmem_limit = int(min(48 * 1024 * 1024, max(16 * 1024 * 1024, 2 * step_bytes)))

    out = pl.pallas_call(
        kernel,
        out_shape=jax.ShapeDtypeStruct((n, ho, wo, cout), jnp.bfloat16),
        grid_spec=pltpu.PrefetchScalarGridSpec(
            num_scalar_prefetch=0,
            grid=(n, nj),
            in_specs=[
                # Center rows of this tile.
                pl.BlockSpec((1, block_h, w, cin), lambda i, j: (i, j, 0, 0)),
                # Halo row above (block size 1 along H -> block index == row index).
                # Clamped at the image top; the kernel zeroes it when j == 0.
                pl.BlockSpec((1, 1, w, cin),
                             lambda i, j: (i, jnp.maximum(j * block_h - 1, 0), 0, 0)),
                # Halo row below, clamped at the image bottom; zeroed when j == nj-1.
                pl.BlockSpec((1, 1, w, cin),
                             lambda i, j: (i, jnp.minimum((j + 1) * block_h, h - 1), 0, 0)),
                pl.BlockSpec((9, cin), lambda i, j: (0, 0)),      # depthwise w * s1
                pl.BlockSpec((cin, cout), lambda i, j: (0, 0)),   # pointwise w * s2
                pl.BlockSpec((1, cin), lambda i, j: (0, 0)),      # bn1 bias
                pl.BlockSpec((1, cout), lambda i, j: (0, 0)),     # bn2 bias
            ],
            # TODO(synk): for cout < 128 a lane-dense (1, th, wo*cout) out block avoids
            # masked partial stores, but needs a sublane->lane relayout in-kernel; kept
            # the (wo, cout) layout which is lane-dense for production cout >= 128.
            out_specs=pl.BlockSpec((1, th, wo, cout), lambda i, j: (i, j, 0, 0)),
            scratch_shapes=[pltpu.VMEM((block_h + 2, w + 2, cin), jnp.bfloat16)],
        ),
        compiler_params=pltpu.CompilerParams(
            # Every row tile builds its own padded scratch from its own blocks, so both
            # axes are parallel (row-tile megacore sharding on v7x, even for N=1).
            dimension_semantics=("parallel", "parallel"),
            vmem_limit_bytes=vmem_limit,
        ),
        cost_estimate=pl.CostEstimate(
            flops=flops, transcendentals=0, bytes_accessed=bytes_accessed),
    )(x, x, x, wdw9, wpw_f, b1f, b2f)
    return out


def basic_block_forward(x_nchw, params, stride=1):
    """PyTorch-parity wrapper: NCHW f32 in / NCHW f32 out (casts only at the boundary)."""
    x_nhwc = jnp.transpose(x_nchw, (0, 2, 3, 1))
    y = basic_block_forward_nhwc(x_nhwc, params, stride=stride)
    return jnp.transpose(y, (0, 3, 1, 2)).astype(jnp.float32)


def make_params(key, cin, cout, eps=1e-5):
    """Deterministic synthetic parameters matching BasicBlock.__init__ shapes."""
    ks = jax.random.split(key, 10)
    # conv1: depthwise, torch shape (cin, 1, 3, 3) -> kernel layout (3, 3, cin)
    wdw = 0.3 * jax.random.normal(ks[0], (3, 3, cin), jnp.float32)
    # conv2: pointwise, torch shape (cout, cin, 1, 1) -> kernel layout (cin, cout)
    wpw = 0.3 * jax.random.normal(ks[1], (cin, cout), jnp.float32)
    # BatchNorm params (inference mode: fold running stats into scale/bias)
    g1 = 1.0 + 0.1 * jax.random.normal(ks[2], (cin,), jnp.float32)
    be1 = 0.1 * jax.random.normal(ks[3], (cin,), jnp.float32)
    m1 = 0.05 * jax.random.normal(ks[4], (cin,), jnp.float32)
    v1 = 1.0 + 0.1 * jax.random.uniform(ks[5], (cin,), jnp.float32)
    g2 = 1.0 + 0.1 * jax.random.normal(ks[6], (cout,), jnp.float32)
    be2 = 0.1 * jax.random.normal(ks[7], (cout,), jnp.float32)
    m2 = 0.05 * jax.random.normal(ks[8], (cout,), jnp.float32)
    v2 = 1.0 + 0.1 * jax.random.uniform(ks[9], (cout,), jnp.float32)

    s1 = (g1 / jnp.sqrt(v1 + eps)).reshape(1, cin)
    b1 = (be1 - m1 * g1 / jnp.sqrt(v1 + eps)).reshape(1, cin)
    s2 = (g2 / jnp.sqrt(v2 + eps)).reshape(1, cout)
    b2 = (be2 - m2 * g2 / jnp.sqrt(v2 + eps)).reshape(1, cout)
    return wdw, wpw, s1, b1, s2, b2


def reference_forward(x_nchw, params, stride=1):
    """Pure-JAX reference mirroring the kernel's precision choices (bf16 activations in,
    folded BN scales, f32 depthwise accumulation, bf16 MXU operands for the 1x1)."""
    wdw, wpw, s1, b1, s2, b2 = params
    x = jnp.transpose(x_nchw, (0, 2, 3, 1)).astype(jnp.bfloat16).astype(jnp.float32)
    cin = x.shape[-1]
    w_dw = (wdw * s1[0]).reshape(3, 3, 1, cin)
    y = lax.conv_general_dilated(
        x, w_dw, window_strides=(stride, stride), padding=((1, 1), (1, 1)),
        dimension_numbers=("NHWC", "HWIO", "NHWC"), feature_group_count=cin)
    y = jnp.maximum(y + b1[0], 0.0)
    wpw_f = (wpw * s2[0]).astype(jnp.bfloat16)
    y = jnp.einsum("nhwc,cd->nhwd", y.astype(jnp.bfloat16), wpw_f,
                   preferred_element_type=jnp.float32)
    y = jnp.maximum(y + b2[0], 0.0)
    return jnp.transpose(y, (0, 3, 1, 2))


if __name__ == "__main__":
    key = jax.random.PRNGKey(0)
    kx, kp = jax.random.split(key)

    N, CIN, COUT, H, W = 2, 4, 8, 16, 16
    STRIDE = 1
    x = jax.random.normal(kx, (N, CIN, H, W), jnp.float32)
    params = make_params(kp, CIN, COUT)

    out = jax.block_until_ready(basic_block_forward(x, params, stride=STRIDE))
    ref = jax.block_until_ready(reference_forward(x, params, stride=STRIDE))

    # bf16 activations / MXU operands => looser tolerance than pure-f32.
    np.testing.assert_allclose(np.asarray(out, np.float32), np.asarray(ref, np.float32),
                               rtol=2e-2, atol=2e-2)
    HO = (H - 1) // STRIDE + 1
    WO = (W - 1) // STRIDE + 1
    assert out.shape == (N, COUT, HO, WO)

    print("KERNEL_OK")
</pallas_src>

<mosaic_0001>
module attributes {stable_mosaic.version = 11 : i64} {
  func.func @_basic_block_kernel(%arg0: i32, %arg1: i32, %arg2: memref<1x8x16x4xbf16, #tpu.memory_space<vmem>>, %arg3: memref<1x1x16x4xbf16, #tpu.memory_space<vmem>>, %arg4: memref<1x1x16x4xbf16, #tpu.memory_space<vmem>>, %arg5: memref<9x4xf32, #tpu.memory_space<vmem>>, %arg6: memref<4x8xbf16, #tpu.memory_space<vmem>>, %arg7: memref<1x4xf32, #tpu.memory_space<vmem>>, %arg8: memref<1x8xf32, #tpu.memory_space<vmem>>, %arg9: memref<1x8x16x8xbf16, #tpu.memory_space<vmem>>, %arg10: memref<10x18x4xbf16, #tpu.memory_space<vmem>>) attributes {dimension_semantics = [#tpu.dimension_semantics<parallel>, #tpu.dimension_semantics<parallel>], iteration_bounds = array<i64: 2, 2>, scalar_prefetch = 0 : i64, scratch_operands = 1 : i64, tpu.core_type = #tpu.core_type<tc>, window_params = [{transform_indices = @transform_0, window_bounds = array<i64: 1, 8, 16, 4>}, {transform_indices = @transform_1, window_bounds = array<i64: 1, 1, 16, 4>}, {transform_indices = @transform_2, window_bounds = array<i64: 1, 1, 16, 4>}, {pipeline_mode = #tpu.pipeline_mode<synchronous>, transform_indices = @transform_3, window_bounds = array<i64: 9, 4>}, {pipeline_mode = #tpu.pipeline_mode<synchronous>, transform_indices = @transform_4, window_bounds = array<i64: 4, 8>}, {pipeline_mode = #tpu.pipeline_mode<synchronous>, transform_indices = @transform_5, window_bounds = array<i64: 1, 4>}, {pipeline_mode = #tpu.pipeline_mode<synchronous>, transform_indices = @transform_6, window_bounds = array<i64: 1, 8>}, {transform_indices = @transform_7, window_bounds = array<i64: 1, 8, 16, 8>}]} {
    %cst = arith.constant 0.000000e+00 : bf16
    %0 = vector.broadcast %cst : bf16 to vector<10x1x4xbf16>
    %c0 = arith.constant 0 : index
    %c0_0 = arith.constant 0 : index
    %c0_1 = arith.constant 0 : index
    %1 = vector.load %arg10[%c0, %c0_0, %c0_1] : memref<10x18x4xbf16, #tpu.memory_space<vmem>>, vector<10x1x4xbf16>
    tpu.vector_store %arg10[%c0, %c0_0, %c0_1], %0 {strides = array<i32>} : memref<10x18x4xbf16, #tpu.memory_space<vmem>>, vector<10x1x4xbf16>,
    %c0_2 = arith.constant 0 : index
    %c17 = arith.constant 17 : index
    %c0_3 = arith.constant 0 : index
    %2 = vector.load %arg10[%c0_2, %c17, %c0_3] : memref<10x18x4xbf16, #tpu.memory_space<vmem>>, vector<10x1x4xbf16>
    tpu.vector_store %arg10[%c0_2, %c17, %c0_3], %0 {strides = array<i32>} : memref<10x18x4xbf16, #tpu.memory_space<vmem>>, vector<10x1x4xbf16>,
    %c0_4 = arith.constant 0 : index
    %c0_5 = arith.constant 0 : index
    %c0_6 = arith.constant 0 : index
    %c0_7 = arith.constant 0 : index
    %3 = vector.load %arg2[%c0_4, %c0_5, %c0_6, %c0_7] : memref<1x8x16x4xbf16, #tpu.memory_space<vmem>>, vector<1x8x16x4xbf16>
    %4 = vector.shape_cast %3 : vector<1x8x16x4xbf16> to vector<8x16x4xbf16>
    %c1 = arith.constant 1 : index
    %c1_8 = arith.constant 1 : index
    %c0_9 = arith.constant 0 : index
    %5 = vector.load %arg10[%c1, %c1_8, %c0_9] : memref<10x18x4xbf16, #tpu.memory_space<vmem>>, vector<8x16x4xbf16>
    tpu.vector_store %arg10[%c1, %c1_8, %c0_9], %4 {strides = array<i32>} : memref<10x18x4xbf16, #tpu.memory_space<vmem>>, vector<8x16x4xbf16>,
    %c0_10 = arith.constant 0 : index
    %c0_11 = arith.constant 0 : index
    %c0_12 = arith.constant 0 : index
    %c0_13 = arith.constant 0 : index
    %6 = vector.load %arg3[%c0_10, %c0_11, %c0_12, %c0_13] : memref<1x1x16x4xbf16, #tpu.memory_space<vmem>>, vector<1x1x16x4xbf16>
    %7 = vector.shape_cast %6 : vector<1x1x16x4xbf16> to vector<1x16x4xbf16>
    %c0_14 = arith.constant 0 : index
    %c1_15 = arith.constant 1 : index
    %c0_16 = arith.constant 0 : index
    %8 = vector.load %arg10[%c0_14, %c1_15, %c0_16] : memref<10x18x4xbf16, #tpu.memory_space<vmem>>, vector<1x16x4xbf16>
    tpu.vector_store %arg10[%c0_14, %c1_15, %c0_16], %7 {strides = array<i32>} : memref<10x18x4xbf16, #tpu.memory_space<vmem>>, vector<1x16x4xbf16>,
    %c0_17 = arith.constant 0 : index
    %c0_18 = arith.constant 0 : index
    %c0_19 = arith.constant 0 : index
    %c0_20 = arith.constant 0 : index
    %9 = vector.load %arg4[%c0_17, %c0_18, %c0_19, %c0_20] : memref<1x1x16x4xbf16, #tpu.memory_space<vmem>>, vector<1x1x16x4xbf16>
    %10 = vector.shape_cast %9 : vector<1x1x16x4xbf16> to vector<1x16x4xbf16>
    %c9 = arith.constant 9 : index
    %c1_21 = arith.constant 1 : index
    %c0_22 = arith.constant 0 : index
    %11 = vector.load %arg10[%c9, %c1_21, %c0_22] : memref<10x18x4xbf16, #tpu.memory_space<vmem>>, vector<1x16x4xbf16>
    tpu.vector_store %arg10[%c9, %c1_21, %c0_22], %10 {strides = array<i32>} : memref<10x18x4xbf16, #tpu.memory_space<vmem>>, vector<1x16x4xbf16>,
    %cst_23 = arith.constant 0.000000e+00 : bf16
    %12 = vector.broadcast %cst_23 : bf16 to vector<1x16x4xbf16>
    %c0_i32 = arith.constant 0 : i32
    %13 = arith.cmpi eq, %arg1, %c0_i32 : i32
    %14 = arith.extui %13 : i1 to i32
    %c0_i32_24 = arith.constant 0 : i32
    %15 = arith.cmpi ne, %14, %c0_i32_24 : i32
    scf.if %15 {
      %c0_68 = arith.constant 0 : index
      %c1_69 = arith.constant 1 : index
      %c0_70 = arith.constant 0 : index
      %116 = vector.load %arg10[%c0_68, %c1_69, %c0_70] : memref<10x18x4xbf16, #tpu.memory_space<vmem>>, vector<1x16x4xbf16>
      tpu.vector_store %arg10[%c0_68, %c1_69, %c0_70], %12 {strides = array<i32>} : memref<10x18x4xbf16, #tpu.memory_space<vmem>>, vector<1x16x4xbf16>,
    } else {
    }
    %c1_i32 = arith.constant 1 : i32
    %16 = arith.cmpi eq, %arg1, %c1_i32 : i32
    %17 = arith.extui %16 : i1 to i32
    %c0_i32_25 = arith.constant 0 : i32
    %18 = arith.cmpi ne, %17, %c0_i32_25 : i32
    scf.if %18 {
      %c9_68 = arith.constant 9 : index
      %c1_69 = arith.constant 1 : index
      %c0_70 = arith.constant 0 : index
      %116 = vector.load %arg10[%c9_68, %c1_69, %c0_70] : memref<10x18x4xbf16, #tpu.memory_space<vmem>>, vector<1x16x4xbf16>
      tpu.vector_store %arg10[%c9_68, %c1_69, %c0_70], %12 {strides = array<i32>} : memref<10x18x4xbf16, #tpu.memory_space<vmem>>, vector<1x16x4xbf16>,
    } else {
    }
    %c0_26 = arith.constant 0 : index
    %c0_27 = arith.constant 0 : index
    %19 = vector.load %arg5[%c0_26, %c0_27] : memref<9x4xf32, #tpu.memory_space<vmem>>, vector<9x4xf32>
    %cst_28 = arith.constant 0.000000e+00 : f32
    %20 = vector.broadcast %cst_28 : f32 to vector<8x16x4xf32>
    %c0_29 = arith.constant 0 : index
    %c0_30 = arith.constant 0 : index
    %c0_31 = arith.constant 0 : index
    %21 = vector.load %arg10[%c0_29, %c0_30, %c0_31] : memref<10x18x4xbf16, #tpu.memory_space<vmem>>, vector<8x16x4xbf16>
    %22 = arith.extf %21 : vector<8x16x4xbf16> to vector<8x16x4xf32>
    %23 = vector.extract_strided_slice %19 {offsets = [0, 0], sizes = [1, 4], strides = [1, 1]} : vector<9x4xf32> to vector<1x4xf32>
    %24 = vector.shape_cast %23 : vector<1x4xf32> to vector<4xf32>
    %25 = vector.shape_cast %24 : vector<4xf32> to vector<1x1x4xf32>
    %26 = vector.broadcast %25 : vector<1x1x4xf32> to vector<8x16x4xf32>
    %27 = arith.mulf %22, %26 : vector<8x16x4xf32>
    %28 = arith.addf %20, %27 : vector<8x16x4xf32>
    %c0_32 = arith.constant 0 : index
    %c1_33 = arith.constant 1 : index
    %c0_34 = arith.constant 0 : index
    %29 = vector.load %arg10[%c0_32, %c1_33, %c0_34] : memref<10x18x4xbf16, #tpu.memory_space<vmem>>, vector<8x16x4xbf16>
    %30 = arith.extf %29 : vector<8x16x4xbf16> to vector<8x16x4xf32>
    %31 = vector.extract_strided_slice %19 {offsets = [1, 0], sizes = [1, 4], strides = [1, 1]} : vector<9x4xf32> to vector<1x4xf32>
    %32 = vector.shape_cast %31 : vector<1x4xf32> to vector<4xf32>
    %33 = vector.shape_cast %32 : vector<4xf32> to vector<1x1x4xf32>
    %34 = vector.broadcast %33 : vector<1x1x4xf32> to vector<8x16x4xf32>
    %35 = arith.mulf %30, %34 : vector<8x16x4xf32>
    %36 = arith.addf %28, %35 : vector<8x16x4xf32>
    %c0_35 = arith.constant 0 : index
    %c2 = arith.constant 2 : index
    %c0_36 = arith.constant 0 : index
    %37 = vector.load %arg10[%c0_35, %c2, %c0_36] : memref<10x18x4xbf16, #tpu.memory_space<vmem>>, vector<8x16x4xbf16>
    %38 = arith.extf %37 : vector<8x16x4xbf16> to vector<8x16x4xf32>
    %39 = vector.extract_strided_slice %19 {offsets = [2, 0], sizes = [1, 4], strides = [1, 1]} : vector<9x4xf32> to vector<1x4xf32>
    %40 = vector.shape_cast %39 : vector<1x4xf32> to vector<4xf32>
    %41 = vector.shape_cast %40 : vector<4xf32> to vector<1x1x4xf32>
    %42 = vector.broadcast %41 : vector<1x1x4xf32> to vector<8x16x4xf32>
    %43 = arith.mulf %38, %42 : vector<8x16x4xf32>
    %44 = arith.addf %36, %43 : vector<8x16x4xf32>
    %c1_37 = arith.constant 1 : index
    %c0_38 = arith.constant 0 : index
    %c0_39 = arith.constant 0 : index
    %45 = vector.load %arg10[%c1_37, %c0_38, %c0_39] : memref<10x18x4xbf16, #tpu.memory_space<vmem>>, vector<8x16x4xbf16>
    %46 = arith.extf %45 : vector<8x16x4xbf16> to vector<8x16x4xf32>
    %47 = vector.extract_strided_slice %19 {offsets = [3, 0], sizes = [1, 4], strides = [1, 1]} : vector<9x4xf32> to vector<1x4xf32>
    %48 = vector.shape_cast %47 : vector<1x4xf32> to vector<4xf32>
    %49 = vector.shape_cast %48 : vector<4xf32> to vector<1x1x4xf32>
    %50 = vector.broadcast %49 : vector<1x1x4xf32> to vector<8x16x4xf32>
    %51 = arith.mulf %46, %50 : vector<8x16x4xf32>
    %52 = arith.addf %44, %51 : vector<8x16x4xf32>
    %c1_40 = arith.constant 1 : index
    %c1_41 = arith.constant 1 : index
    %c0_42 = arith.constant 0 : index
    %53 = vector.load %arg10[%c1_40, %c1_41, %c0_42] : memref<10x18x4xbf16, #tpu.memory_space<vmem>>, vector<8x16x4xbf16>
    %54 = arith.extf %53 : vector<8x16x4xbf16> to vector<8x16x4xf32>
    %55 = vector.extract_strided_slice %19 {offsets = [4, 0], sizes = [1, 4], strides = [1, 1]} : vector<9x4xf32> to vector<1x4xf32>
    %56 = vector.shape_cast %55 : vector<1x4xf32> to vector<4xf32>
    %57 = vector.shape_cast %56 : vector<4xf32> to vector<1x1x4xf32>
    %58 = vector.broadcast %57 : vector<1x1x4xf32> to vector<8x16x4xf32>
    %59 = arith.mulf %54, %58 : vector<8x16x4xf32>
    %60 = arith.addf %52, %59 : vector<8x16x4xf32>
    %c1_43 = arith.constant 1 : index
    %c2_44 = arith.constant 2 : index
    %c0_45 = arith.constant 0 : index
    %61 = vector.load %arg10[%c1_43, %c2_44, %c0_45] : memref<10x18x4xbf16, #tpu.memory_space<vmem>>, vector<8x16x4xbf16>
    %62 = arith.extf %61 : vector<8x16x4xbf16> to vector<8x16x4xf32>
    %63 = vector.extract_strided_slice %19 {offsets = [5, 0], sizes = [1, 4], strides = [1, 1]} : vector<9x4xf32> to vector<1x4xf32>
    %64 = vector.shape_cast %63 : vector<1x4xf32> to vector<4xf32>
    %65 = vector.shape_cast %64 : vector<4xf32> to vector<1x1x4xf32>
    %66 = vector.broadcast %65 : vector<1x1x4xf32> to vector<8x16x4xf32>
    %67 = arith.mulf %62, %66 : vector<8x16x4xf32>
    %68 = arith.addf %60, %67 : vector<8x16x4xf32>
    %c2_46 = arith.constant 2 : index
    %c0_47 = arith.constant 0 : index
    %c0_48 = arith.constant 0 : index
    %69 = vector.load %arg10[%c2_46, %c0_47, %c0_48] : memref<10x18x4xbf16, #tpu.memory_space<vmem>>, vector<8x16x4xbf16>
    %70 = arith.extf %69 : vector<8x16x4xbf16> to vector<8x16x4xf32>
    %71 = vector.extract_strided_slice %19 {offsets = [6, 0], sizes = [1, 4], strides = [1, 1]} : vector<9x4xf32> to vector<1x4xf32>
    %72 = vector.shape_cast %71 : vector<1x4xf32> to vector<4xf32>
    %73 = vector.shape_cast %72 : vector<4xf32> to vector<1x1x4xf32>
    %74 = vector.broadcast %73 : vector<1x1x4xf32> to vector<8x16x4xf32>
    %75 = arith.mulf %70, %74 : vector<8x16x4xf32>
    %76 = arith.addf %68, %75 : vector<8x16x4xf32>
    %c2_49 = arith.constant 2 : index
    %c1_50 = arith.constant 1 : index
    %c0_51 = arith.constant 0 : index
    %77 = vector.load %arg10[%c2_49, %c1_50, %c0_51] : memref<10x18x4xbf16, #tpu.memory_space<vmem>>, vector<8x16x4xbf16>
    %78 = arith.extf %77 : vector<8x16x4xbf16> to vector<8x16x4xf32>
    %79 = vector.extract_strided_slice %19 {offsets = [7, 0], sizes = [1, 4], strides = [1, 1]} : vector<9x4xf32> to vector<1x4xf32>
    %80 = vector.shape_cast %79 : vector<1x4xf32> to vector<4xf32>
    %81 = vector.shape_cast %80 : vector<4xf32> to vector<1x1x4xf32>
    %82 = vector.broadcast %81 : vector<1x1x4xf32> to vector<8x16x4xf32>
    %83 = arith.mulf %78, %82 : vector<8x16x4xf32>
    %84 = arith.addf %76, %83 : vector<8x16x4xf32>
    %c2_52 = arith.constant 2 : index
    %c2_53 = arith.constant 2 : index
    %c0_54 = arith.constant 0 : index
    %85 = vector.load %arg10[%c2_52, %c2_53, %c0_54] : memref<10x18x4xbf16, #tpu.memory_space<vmem>>, vector<8x16x4xbf16>
    %86 = arith.extf %85 : vector<8x16x4xbf16> to vector<8x16x4xf32>
    %87 = vector.extract_strided_slice %19 {offsets = [8, 0], sizes = [1, 4], strides = [1, 1]} : vector<9x4xf32> to vector<1x4xf32>
    %88 = vector.shape_cast %87 : vector<1x4xf32> to vector<4xf32>
    %89 = vector.shape_cast %88 : vector<4xf32> to vector<1x1x4xf32>
    %90 = vector.broadcast %89 : vector<1x1x4xf32> to vector<8x16x4xf32>
    %91 = arith.mulf %86, %90 : vector<8x16x4xf32>
    %92 = arith.addf %84, %91 : vector<8x16x4xf32>
    %c0_55 = arith.constant 0 : index
    %c0_56 = arith.constant 0 : index
    %93 = vector.load %arg7[%c0_55, %c0_56] : memref<1x4xf32, #tpu.memory_space<vmem>>, vector<1x4xf32>
    %94 = vector.shape_cast %93 : vector<1x4xf32> to vector<4xf32>
    %95 = vector.shape_cast %94 : vector<4xf32> to vector<1x1x4xf32>
    %96 = vector.broadcast %95 : vector<1x1x4xf32> to vector<8x16x4xf32>
    %97 = arith.addf %92, %96 : vector<8x16x4xf32>
    %cst_57 = arith.constant 0.000000e+00 : f32
    %98 = vector.broadcast %cst_57 : f32 to vector<8x16x4xf32>
    %99 = arith.maximumf %97, %98 : vector<8x16x4xf32>
    %100 = arith.truncf %99 : vector<8x16x4xf32> to vector<8x16x4xbf16>
    %101 = vector.shape_cast %100 : vector<8x16x4xbf16> to vector<128x4xbf16>
    %c0_58 = arith.constant 0 : index
    %c0_59 = arith.constant 0 : index
    %102 = vector.load %arg6[%c0_58, %c0_59] : memref<4x8xbf16, #tpu.memory_space<vmem>>, vector<4x8xbf16>
    %cst_60 = arith.constant dense<0.000000e+00> : vector<128x8xf32>
    %103 = tpu.matmul %101, %102, %cst_60 {dimension_numbers = #tpu.dot_dimension_numbers<[1], [0], [0], [1], [0, 0, 1, 1], [], []>} : vector<128x4xbf16>, vector<4x8xbf16>, vector<128x8xf32> -> vector<128x8xf32>
    %c0_61 = arith.constant 0 : index
    %c0_62 = arith.constant 0 : index
    %104 = vector.load %arg8[%c0_61, %c0_62] : memref<1x8xf32, #tpu.memory_space<vmem>>, vector<1x8xf32>
    %105 = vector.shape_cast %104 : vector<1x8xf32> to vector<8xf32>
    %106 = vector.shape_cast %105 : vector<8xf32> to vector<1x8xf32>
    %107 = vector.broadcast %106 : vector<1x8xf32> to vector<128x8xf32>
    %108 = arith.addf %103, %107 : vector<128x8xf32>
    %cst_63 = arith.constant 0.000000e+00 : f32
    %109 = vector.broadcast %cst_63 : f32 to vector<128x8xf32>
    %110 = arith.maximumf %108, %109 : vector<128x8xf32>
    %111 = vector.shape_cast %110 : vector<128x8xf32> to vector<8x16x8xf32>
    %112 = arith.truncf %111 : vector<8x16x8xf32> to vector<8x16x8xbf16>
    %c0_64 = arith.constant 0 : index
    %c0_65 = arith.constant 0 : index
    %c0_66 = arith.constant 0 : index
    %c0_67 = arith.constant 0 : index
    %113 = vector.load %arg9[%c0_64, %c0_65, %c0_66, %c0_67] : memref<1x8x16x8xbf16, #tpu.memory_space<vmem>>, vector<1x8x16x8xbf16>
    %114 = vector.shape_cast %113 : vector<1x8x16x8xbf16> to vector<8x16x8xbf16>
    %115 = vector.shape_cast %112 : vector<8x16x8xbf16> to vector<1x8x16x8xbf16>
    tpu.vector_store %arg9[%c0_64, %c0_65, %c0_66, %c0_67], %115 {strides = array<i32>} : memref<1x8x16x8xbf16, #tpu.memory_space<vmem>>, vector<1x8x16x8xbf16>,
    return
  }
  func.func @transform_0(%arg0: i32, %arg1: i32) -> (i32, i32, i32, i32) {
    %c0_i32 = arith.constant 0 : i32
    %c0_i32_0 = arith.constant 0 : i32
    %c0_i32_1 = arith.constant 0 : i32
    return %arg0, %arg1, %c0_i32, %c0_i32_0 : i32, i32, i32, i32
  }
  func.func @transform_1(%arg0: i32, %arg1: i32) -> (i32, i32, i32, i32) {
    %c8_i32 = arith.constant 8 : i32
    %0 = arith.muli %arg1, %c8_i32 : i32
    %c1_i32 = arith.constant 1 : i32
    %1 = arith.subi %0, %c1_i32 : i32
    %c0_i32 = arith.constant 0 : i32
    %2 = arith.maxsi %1, %c0_i32 : i32
    %c0_i32_0 = arith.constant 0 : i32
    %c0_i32_1 = arith.constant 0 : i32
    %c0_i32_2 = arith.constant 0 : i32
    return %arg0, %2, %c0_i32_0, %c0_i32_1 : i32, i32, i32, i32
  }
  func.func @transform_2(%arg0: i32, %arg1: i32) -> (i32, i32, i32, i32) {
    %c1_i32 = arith.constant 1 : i32
    %0 = arith.addi %arg1, %c1_i32 : i32
    %c8_i32 = arith.constant 8 : i32
    %1 = arith.muli %0, %c8_i32 : i32
    %c15_i32 = arith.constant 15 : i32
    %2 = arith.minsi %1, %c15_i32 : i32
    %c0_i32 = arith.constant 0 : i32
    %c0_i32_0 = arith.constant 0 : i32
    %c0_i32_1 = arith.constant 0 : i32
    return %arg0, %2, %c0_i32, %c0_i32_0 : i32, i32, i32, i32
  }
  func.func @transform_3(%arg0: i32, %arg1: i32) -> (i32, i32) {
    %c0_i32 = arith.constant 0 : i32
    %c0_i32_0 = arith.constant 0 : i32
    %c0_i32_1 = arith.constant 0 : i32
    return %c0_i32, %c0_i32_0 : i32, i32
  }
  func.func @transform_4(%arg0: i32, %arg1: i32) -> (i32, i32) {
    %c0_i32 = arith.constant 0 : i32
    %c0_i32_0 = arith.constant 0 : i32
    %c0_i32_1 = arith.constant 0 : i32
    return %c0_i32, %c0_i32_0 : i32, i32
  }
  func.func @transform_5(%arg0: i32, %arg1: i32) -> (i32, i32) {
    %c0_i32 = arith.constant 0 : i32
    %c0_i32_0 = arith.constant 0 : i32
    %c0_i32_1 = arith.constant 0 : i32
    return %c0_i32, %c0_i32_0 : i32, i32
  }
  func.func @transform_6(%arg0: i32, %arg1: i32) -> (i32, i32) {
    %c0_i32 = arith.constant 0 : i32
    %c0_i32_0 = arith.constant 0 : i32
    %c0_i32_1 = arith.constant 0 : i32
    return %c0_i32, %c0_i32_0 : i32, i32
  }
  func.func @transform_7(%arg0: i32, %arg1: i32) -> (i32, i32, i32, i32) {
    %c0_i32 = arith.constant 0 : i32
    %c0_i32_0 = arith.constant 0 : i32
    %c0_i32_1 = arith.constant 0 : i32
    return %arg0, %arg1, %c0_i32, %c0_i32_0 : i32, i32, i32, i32
  }
}

</mosaic_0001>

<bundles_post_ra>
// kernel: tpu_custom_call.1
= control target key start
LH: loop header
LB: loop body
LE: loop exit
PB: predicated region body
PF: predicated region fallthrough
CT: control target
= control target key end

     0   :  { %s2606_s24 = smov 0   ;;  %s2608_s25 = smov 0   ;;  %s3371_s0 = inlined_call_operand.vmem [shape: bf16[2,16,16,4], index: 0, kind: input, shape index: {}]   ;;  %s3372_s1 = inlined_call_operand.vmem [shape: bf16[2,16,16,4], index: 1, kind: input, shape index: {}]   ;;  %s3373_s2 = inlined_call_operand.vmem [shape: bf16[2,16,16,4], index: 2, kind: input, shape index: {}]   ;;  %s3374_s3 = inlined_call_operand.vmem [shape: f32[9,4], index: 3, kind: input, shape index: {}]   ;;  %s3375_s4 = inlined_call_operand.vmem [shape: bf16[4,8], index: 4, kind: input, shape index: {}]   ;;  %s3376_s5 = inlined_call_operand.vmem [shape: f32[1,4], index: 5, kind: input, shape index: {}]   ;;  %s3377_s6 = inlined_call_operand.vmem [shape: f32[1,8], index: 6, kind: input, shape index: {}]   ;;  %s3378_s7 = inlined_call_operand.vmem [shape: bf16[2,16,16,8], index: 7, kind: output, shape index: {}]  }
   0x1   :  { %s2610_s26 = smov 0   ;;  %s2612_s27 = smov 0  }
   0x2   :  { %s2614_s28 = smov 0  }
   0x3 LB: > { %s26_s29 = sadd.s32 1, %s2554_s26  ;;  %s29_s30 = sadd.s32 1, %s2558_s27  ;;  %s2562_s28 = sphi %s2614_s28, %s17_s28   ;;  %s2558_s27 = sphi %s2612_s27, %s3391_s27   ;;  %s2554_s26 = sphi %s2610_s26, %s3390_s26   ;;  %s2550_s25 = sphi %s2608_s25, %s3389_s25   ;;  %s2546_s24 = sphi %s2606_s24, %s3388_s24  }
   0x4   : > { %p27_p0 = scmp.ge.s32.totalorder %s26_s29, 2  ;;  %p2310_p1 = scmp.ge.s32.totalorder %s2562_s28, 1 }
   0x5   : > { %p323_p2 = scmp.lt.s32.totalorder %s2562_s28, 5 }
   0x6   : > { %s3393_s29 = smov (%p27_p0, %s26_s29), 0  ;;  %s3395_s30 = smov (!%p27_p0, %s29_s30), %s2558_s27 }
   0x7   : > { %p324_p3 = pnand %p2310_p1, %p323_p2  ;;  %p31_p4 = scmp.ge.s32.totalorder %s3395_s30, 2 }
   0x8   : > { %s2653_s8 = sshll.u32 (!%p324_p3), %s2546_s24, 3  ;;  %p392_p5 = scmp.lt.s32.totalorder (!%p324_p3), %s2550_s25, 1 }
   0x9   : > { %s3397_s30 = smov (%p31_p4, %s3395_s30), 0  ;;  %327 = sbr.rel (%p324_p3) target bundleno = 482 (0x1e2), region = 48 }
   0xa   : > { %p394_p6 = scmp.lt.s32.totalorder (!%p324_p3), %s2653_s8, 15  ;;  %s2704_s11 = sadd.s32 (!%p324_p3), 4294967295, %s2653_s8 }
   0xb   : > { %p404_p7 = scmp.gt.s32.totalorder (!%p324_p3), %s2704_s11, 0  ;;  %p2317_p8 = scmp.lt.s32.totalorder (!%p324_p3), %s2704_s11, 15 }
   0xc   : > { %s2374_s21 = sadd.s32 (!%p324_p3), 8, %s2653_s8  ;;  %p2336_p10 = scmp.ne.s32.totalorder (!%p324_p3), %s2546_s24, 0 }
   0xd   : > { %p2759_p9 = scmp.lt.s32.totalorder (!%p324_p3), %s2374_s21, 15 }
   0xe   : > { %vm448_vm0 = vcmask 24576   ;;  %vm449_vm1 = vsmask.f32 256  ;;  %v451_v0 = vld [vmem:[#allocation2] sm:$0x1]  ;;  %s3399_s25 = smov (!%p392_p5, %s2550_s25), 1 }
   0xf   : > { %vm2642_vm2 = vmand %vm448_vm0, %vm449_vm1  ;;  %v454_v2 = vld [vmem:[#allocation2 + $0xc] sm:$0x1]  ;;  %v457_v3 = vld [vmem:[#allocation2 + $0x18] sm:$0x1]  ;;  %vm481_vm3 = vsmask.f32 7938 }
  0x10   : > { %v452_v4 = vsel %vm2642_vm2, 0, %v451_v0  ;;  %v455_v5 = vsel %vm2642_vm2, 0, %v454_v2  ;;  %v458_v6 = vsel %vm2642_vm2, 0, %v457_v3  ;;  %v460_v7 = vld [vmem:[#allocation2 + $0x24] sm:$0x1]  ;;  %vm2664_vm4 = vmand %vm448_vm0, %vm481_vm3  ;;  %s2700_s9 = sshll.u32 %s3399_s25, 5 }
  0x11   : > { %453 = vst [vmem:[#allocation2] sm:$0x1] %v452_v4  ;;  %456 = vst [vmem:[#allocation2 + $0xc] sm:$0x1] %v455_v5  ;;  %v461_v8 = vsel %vm2642_vm2, 0, %v460_v7  ;;  %s395_s10 = scalar_select %p394_p6, %s2653_s8, 15 }
  0x12   : > { %459 = vst [vmem:[#allocation2 + $0x18] sm:$0x1] %v458_v6  ;;  %v463_v9 = vld [vmem:[#allocation2 + $0x30] sm:$0x1]  ;;  %v466_v10 = vld [vmem:[#allocation2 + $0x3c] sm:$0x1] }
  0x13   : > { %462 = vst [vmem:[#allocation2 + $0x24] sm:$0x1] %v461_v8  ;;  %v464_v11 = vsel %vm2642_vm2, 0, %v463_v9  ;;  %v467_v12 = vsel %vm2642_vm2, 0, %v466_v10  ;;  %v469_v13 = vld [vmem:[#allocation2 + $0x48] sm:$0x1] }
  0x14   : > { %v472_v14 = vld [vmem:[#allocation2 + $0x54] sm:$0x1]  ;;  %465 = vst [vmem:[#allocation2 + $0x30] sm:$0x1] %v464_v11  ;;  %468 = vst [vmem:[#allocation2 + $0x3c] sm:$0x1] %v467_v12 }
  0x15   : > { %v470_v16 = vsel %vm2642_vm2, 0, %v469_v13  ;;  %v473_v17 = vsel %vm2642_vm2, 0, %v472_v14  ;;  %v475_v18 = vld [vmem:[#allocation2 + $0x60] sm:$0x1]  ;;  %v478_v19 = vld [vmem:[#allocation2 + $0x6c] sm:$0x1] }
  0x16   : > { %471 = vst [vmem:[#allocation2 + $0x48] sm:$0x1] %v470_v16  ;;  %474 = vst [vmem:[#allocation2 + $0x54] sm:$0x1] %v473_v17  ;;  %v476_v20 = vsel %vm2642_vm2, 0, %v475_v18  ;;  %v479_v21 = vsel %vm2642_vm2, 0, %v478_v19 }
  0x17   : > { %v483_v22 = vld [vmem:[#allocation2 + $0x8] sm:$0x1]  ;;  %v486_v23 = vld [vmem:[#allocation2 + $0x14] sm:$0x1]  ;;  %477 = vst [vmem:[#allocation2 + $0x60] sm:$0x1] %v476_v20 }
  0x18   : > { %480 = vst [vmem:[#allocation2 + $0x6c] sm:$0x1] %v479_v21  ;;  %v484_v24 = vsel %vm2664_vm4, 0, %v483_v22  ;;  %v487_v25 = vsel %vm2664_vm4, 0, %v486_v23  ;;  %v489_v26 = vld [vmem:[#allocation2 + $0x20] sm:$0x1] }
  0x19   : > { %v492_v27 = vld [vmem:[#allocation2 + $0x2c] sm:$0x1]  ;;  %485 = vst [vmem:[#allocation2 + $0x8] sm:$0x1] %v484_v24  ;;  %488 = vst [vmem:[#allocation2 + $0x14] sm:$0x1] %v487_v25 }
  0x1a   : > { %v490_v28 = vsel %vm2664_vm4, 0, %v489_v26  ;;  %v493_v29 = vsel %vm2664_vm4, 0, %v492_v27  ;;  %v495_v30 = vld [vmem:[#allocation2 + $0x38] sm:$0x1]  ;;  %v498_v31 = vld [vmem:[#allocation2 + $0x44] sm:$0x1] }
  0x1b   : > { %491 = vst [vmem:[#allocation2 + $0x20] sm:$0x1] %v490_v28  ;;  %494 = vst [vmem:[#allocation2 + $0x2c] sm:$0x1] %v493_v29  ;;  %v496_v32 = vsel %vm2664_vm4, 0, %v495_v30  ;;  %v499_v33 = vsel %vm2664_vm4, 0, %v498_v31 }
  0x1c   : > { %v501_v34 = vld [vmem:[#allocation2 + $0x50] sm:$0x1]  ;;  %v504_v35 = vld [vmem:[#allocation2 + $0x5c] sm:$0x1]  ;;  %497 = vst [vmem:[#allocation2 + $0x38] sm:$0x1] %v496_v32 }
  0x1d   : > { %500 = vst [vmem:[#allocation2 + $0x44] sm:$0x1] %v499_v33  ;;  %v502_v36 = vsel %vm2664_vm4, 0, %v501_v34  ;;  %v505_v37 = vsel %vm2664_vm4, 0, %v504_v35  ;;  %v507_v38 = vld [vmem:[#allocation2 + $0x68] sm:$0x1] }
  0x1e   : > { %v510_v39 = vld [vmem:[#allocation2 + $0x74] sm:$0x1]  ;;  %503 = vst [vmem:[#allocation2 + $0x50] sm:$0x1] %v502_v36  ;;  %506 = vst [vmem:[#allocation2 + $0x5c] sm:$0x1] %v505_v37 }
  0x1f   : > { %v508_v40 = vsel %vm2664_vm4, 0, %v507_v38  ;;  %v511_v41 = vsel %vm2664_vm4, 0, %v510_v39  ;;  %s2312_s12 = sshll.u32 %s395_s10, 1  ;;  %vm692_vm5 = vcmask 27648   ;;  %vm529_vm6 = vsmask.f32 4368 }
  0x20   : > { %509 = vst [vmem:[#allocation2 + $0x68] sm:$0x1] %v508_v40  ;;  %512 = vst [vmem:[#allocation2 + $0x74] sm:$0x1] %v511_v41  ;;  %s398_s13 = sadd.s32 %s2700_s9, %s2312_s12  ;;  %v694_v50 = vld [vmem:[#allocation2 + $0xc] sm:$0xf] }
  0x21   : > { %s2314_s14 = sshll.u32 %s398_s13, 2  ;;  %vm2725_vm7 = vmand %vm692_vm5, %vm481_vm3  ;;  %v702_v59 = vld [vmem:[#allocation2 + $0x18] sm:$0xf]  ;;  %v699_v0 = vld [vmem:[#allocation2 + $0x14] sm:$0x1]  ;;  %s3403_s21 = smov (!%p2759_p9, %s2374_s21), 15 }
  0x22   : > { %s2711_s17 = scalar_lea.vmem %s3371_s0, %s2314_s14  ;;  %s2716_s20 = scalar_lea.vmem %s3378_s7, %s2314_s14  ;;  %vm2732_vm8 = vmor %vm449_vm1, %vm529_vm6  ;;  %v706_v10 = vld [vmem:[#allocation2 + $0x20] sm:$0x1]  ;;  %v709_v20 = vld [vmem:[#allocation2 + $0x24] sm:$0xf] }
  0x23   : > { %v513_v42 = vld [vmem:[%s2711_s17] sm:$0xf]  ;;  %v514_v43 = vld [vmem:[%s2711_s17 + $0x4] sm:$0xf]  ;;  %v515_v44 = vld [vmem:[%s2711_s17 + $0x8] sm:$0xf] }
  0x24   : > { %v532_v45 = vshrl.u32 %v513_v42, 16  ;;  %v535_v46 = vshll.u32 %v513_v42, 16  ;;  %v540_v47 = vshrl.u32 %v514_v43, 16  ;;  %v543_v48 = vshll.u32 %v514_v43, 16  ;;  %v516_v49 = vld [vmem:[%s2711_s17 + $0xc] sm:$0xf] }
  0x25   : > { %v549_v51 = vshrl.u32 %v515_v44, 16  ;;  %v552_v52 = vshll.u32 %v515_v44, 16  ;;  %v557_v53 = vshrl.u32 %v516_v49, 16  ;;  %v560_v54 = vshll.u32 %v516_v49, 16  ;;  %v517_v55 = vld [vmem:[%s2711_s17 + $0x10] sm:$0xf] }
  0x26   : > { %v534_v57 = vrot.slane %v532_v45, 7  ;;  %v542_v58 = vrot.slane %v540_v47, 7  ;;  %v566_v60 = vshrl.u32 %v517_v55, 16  ;;  %v569_v61 = vshll.u32 %v517_v55, 16  ;;  %v518_v62 = vld [vmem:[%s2711_s17 + $0x14] sm:$0xf] }
  0x27   : > { %v551_v2 = vrot.slane %v549_v51, 7  ;;  %v559_v3 = vrot.slane %v557_v53, 7  ;;  %v574_v4 = vshrl.u32 %v518_v62, 16  ;;  %v577_v5 = vshll.u32 %v518_v62, 16  ;;  %v519_v15 = vld [vmem:[%s2711_s17 + $0x18] sm:$0xf] }
  0x28   : > { %v537_v6 = vor.u32 %v535_v46, %v534_v57  ;;  %v538_v7 = vrot.slane %v534_v57, 4  ;;  %v545_v8 = vor.u32 %v543_v48, %v542_v58  ;;  %v547_v9 = vrot.slane %v542_v58, 4  ;;  %v520_v21 = vld [vmem:[%s2711_s17 + $0x1c] sm:$0xf]  ;;  %s405_s22 = scalar_select %p404_p7, %s2704_s11, 0 }
  0x29   : > { %v554_v11 = vor.u32 %v552_v52, %v551_v2  ;;  %v555_v12 = vrot.slane %v551_v2, 4  ;;  %v562_v13 = vor.u32 %v560_v54, %v559_v3  ;;  %v564_v14 = vrot.slane %v559_v3, 4  ;;  %v713_v26 = vld [vmem:[#allocation2 + $0x2c] sm:$0x1]  ;;  %v521_v27 = vld [vmem:[%s2711_s17 + $0x20] sm:$0xf] }
  0x2a   : > { %v695_v16 = vsel %vm2725_vm7, %v537_v6, %v694_v50  ;;  %v546_v17 = vsel %vm2732_vm8, %v538_v7, %v545_v8  ;;  %v700_v18 = vsel %vm2642_vm2, %v547_v9, %v699_v0  ;;  %v568_v19 = vrot.slane %v566_v60, 7  ;;  %v522_v32 = vld [vmem:[%s2711_s17 + $0x24] sm:$0xf]  ;;  %s3401_s22 = smov (!%p2317_p8, %s405_s22), 15  ;;  %v716_v35 = vld [vmem:[#allocation2 + $0x30] sm:$0xf] }
  0x2b   : > { %696 = vst [vmem:[#allocation2 + $0xc] sm:$0xf] %v695_v16  ;;  %698 = vst.msk [vmem:[#allocation2 + $0x10] sm:$0xf] %vm692_vm5, %v546_v17  ;;  %v703_v22 = vsel %vm2725_vm7, %v554_v11, %v702_v59  ;;  %v563_v23 = vsel %vm2732_vm8, %v555_v12, %v562_v13  ;;  %v707_v24 = vsel %vm2642_vm2, %v564_v14, %v706_v10  ;;  %v576_v25 = vrot.slane %v574_v4, 7  ;;  %s2322_s25 = sshll.u32 %s3401_s22, 1 }
  0x2c   : > { %701 = vst [vmem:[#allocation2 + $0x14] sm:$0x1] %v700_v18  ;;  %704 = vst [vmem:[#allocation2 + $0x18] sm:$0xf] %v703_v22  ;;  %v571_v28 = vor.u32 %v569_v61, %v568_v19  ;;  %v572_v29 = vrot.slane %v568_v19, 4  ;;  %v583_v30 = vshrl.u32 %v519_v15, 16  ;;  %s2781_s8 = sadd.s32 %s2322_s25, %s2700_s9 }
  0x2d   : > { %705 = vst.msk [vmem:[#allocation2 + $0x1c] sm:$0xf] %vm692_vm5, %v563_v23  ;;  %708 = vst [vmem:[#allocation2 + $0x20] sm:$0x1] %v707_v24  ;;  %v586_v31 = vshll.u32 %v519_v15, 16  ;;  %v579_v33 = vor.u32 %v577_v5, %v576_v25  ;;  %v581_v34 = vrot.slane %v576_v25, 4 }
  0x2e   : > { %v591_v36 = vshrl.u32 %v520_v21, 16  ;;  %v594_v37 = vshll.u32 %v520_v21, 16  ;;  %v710_v38 = vsel %vm2725_vm7, %v571_v28, %v709_v20  ;;  %v585_v39 = vrot.slane %v583_v30, 7  ;;  %v523_v42 = vld [vmem:[%s2711_s17 + $0x28] sm:$0xf]  ;;  %s2324_s10 = sshll.u32 %s2781_s8, 2 }
  0x2f   : > { %v600_v40 = vshrl.u32 %v521_v27, 16  ;;  %v603_v41 = vshll.u32 %v521_v27, 16  ;;  %711 = vst [vmem:[#allocation2 + $0x24] sm:$0xf] %v710_v38  ;;  %v580_v43 = vsel %vm2732_vm8, %v572_v29, %v579_v33  ;;  %v714_v44 = vsel %vm2642_vm2, %v581_v34, %v713_v26  ;;  %v720_v46 = vld [vmem:[#allocation2 + $0x38] sm:$0x1]  ;;  %s414_s14 = scalar_lea.vmem %s3372_s1, %s2324_s10 }
  0x30   : > { %v593_v45 = vrot.slane %v591_v36, 7  ;;  %v723_v47 = vld [vmem:[#allocation2 + $0x3c] sm:$0xf]  ;;  %v608_v48 = vshrl.u32 %v522_v32, 16  ;;  %712 = vst.msk [vmem:[#allocation2 + $0x28] sm:$0xf] %vm692_vm5, %v580_v43  ;;  %v588_v49 = vor.u32 %v586_v31, %v585_v39 }
  0x31   : > { %715 = vst [vmem:[#allocation2 + $0x2c] sm:$0x1] %v714_v44  ;;  %v589_v50 = vrot.slane %v585_v39, 4  ;;  %v602_v51 = vrot.slane %v600_v40, 7  ;;  %v611_v52 = vshll.u32 %v522_v32, 16  ;;  %v617_v58 = vshrl.u32 %v523_v42, 16 }
  0x32   : > { %v727_v53 = vld [vmem:[#allocation2 + $0x44] sm:$0x1]  ;;  %v596_v54 = vor.u32 %v594_v37, %v593_v45  ;;  %v598_v55 = vrot.slane %v593_v45, 4  ;;  %v610_v57 = vrot.slane %v608_v48, 7  ;;  %v524_v59 = vld [vmem:[%s2711_s17 + $0x2c] sm:$0xf]  ;;  %v717_v60 = vsel %vm2725_vm7, %v588_v49, %v716_v35 }
  0x33   : > { %v605_v61 = vor.u32 %v603_v41, %v602_v51  ;;  %v606_v62 = vrot.slane %v602_v51, 4  ;;  %v620_v0 = vshll.u32 %v523_v42, 16  ;;  %v525_v2 = vld [vmem:[%s2711_s17 + $0x30] sm:$0xf]  ;;  %718 = vst [vmem:[#allocation2 + $0x30] sm:$0xf] %v717_v60 }
  0x34   : > { %v597_v3 = vsel %vm2732_vm8, %v589_v50, %v596_v54  ;;  %v721_v4 = vsel %vm2642_vm2, %v598_v55, %v720_v46  ;;  %v613_v5 = vor.u32 %v611_v52, %v610_v57  ;;  %v615_v6 = vrot.slane %v610_v57, 4  ;;  %v730_v7 = vld [vmem:[#allocation2 + $0x48] sm:$0xf]  ;;  %v526_v8 = vld [vmem:[%s2711_s17 + $0x34] sm:$0xf]  ;;  %s3405_s21 = smov (!%p2759_p9, %s3403_s21), 15 }
  0x35   : > { %719 = vst.msk [vmem:[#allocation2 + $0x34] sm:$0xf] %vm692_vm5, %v597_v3  ;;  %722 = vst [vmem:[#allocation2 + $0x38] sm:$0x1] %v721_v4  ;;  %v724_v9 = vsel %vm2725_vm7, %v605_v61, %v723_v47  ;;  %v619_v10 = vrot.slane %v617_v58, 7  ;;  %v625_v11 = vshrl.u32 %v524_v59, 16 }
  0x36   : > { %v628_v12 = vshll.u32 %v524_v59, 16  ;;  %v527_v13 = vld [vmem:[%s2711_s17 + $0x38] sm:$0xf]  ;;  %725 = vst [vmem:[#allocation2 + $0x3c] sm:$0xf] %v724_v9  ;;  %v614_v14 = vsel %vm2732_vm8, %v606_v62, %v613_v5  ;;  %v728_v15 = vsel %vm2642_vm2, %v615_v6, %v727_v53  ;;  %v634_v17 = vshrl.u32 %v525_v2, 16 }
  0x37   : > { %v734_v16 = vld [vmem:[#allocation2 + $0x50] sm:$0x1]  ;;  %v637_v18 = vshll.u32 %v525_v2, 16  ;;  %s2329_s11 = sshll.u32 %s3405_s21, 1  ;;  %726 = vst.msk [vmem:[#allocation2 + $0x40] sm:$0xf] %vm692_vm5, %v614_v14  ;;  %v622_v19 = vor.u32 %v620_v0, %v619_v10 }
  0x38   : > { %729 = vst [vmem:[#allocation2 + $0x44] sm:$0x1] %v728_v15  ;;  %v623_v20 = vrot.slane %v619_v10, 4  ;;  %v627_v21 = vrot.slane %v625_v11, 7  ;;  %v642_v22 = vshrl.u32 %v526_v8, 16  ;;  %s429_s15 = sadd.s32 %s2329_s11, %s2700_s9  ;;  %v636_v24 = vrot.slane %v634_v17, 7 }
  0x39   : > { %v528_v23 = vld [vmem:[%s2711_s17 + $0x3c] sm:$0xf]  ;;  %v645_v25 = vshll.u32 %v526_v8, 16  ;;  %v651_v26 = vshrl.u32 %v527_v13, 16  ;;  %v654_v27 = vshll.u32 %v527_v13, 16  ;;  %s2331_s16 = sshll.u32 %s429_s15, 2  ;;  %v731_v28 = vsel %vm2725_vm7, %v622_v19, %v730_v7 }
  0x3a   : > { %v630_v29 = vor.u32 %v628_v12, %v627_v21  ;;  %v632_v30 = vrot.slane %v627_v21, 4  ;;  %v737_v31 = vld [vmem:[#allocation2 + $0x54] sm:$0xf]  ;;  %v644_v32 = vrot.slane %v642_v22, 7  ;;  %v741_v33 = vld [vmem:[#allocation2 + $0x5c] sm:$0x1]  ;;  %s431_s19 = scalar_lea.vmem %s3373_s2, %s2331_s16  ;;  %v639_v34 = vor.u32 %v637_v18, %v636_v24 }
  0x3b   : > { %732 = vst [vmem:[#allocation2 + $0x48] sm:$0xf] %v731_v28  ;;  %v640_v35 = vrot.slane %v636_v24, 4  ;;  %v653_v36 = vrot.slane %v651_v26, 7  ;;  %v659_v37 = vshrl.u32 %v528_v23, 16  ;;  %v662_v52 = vshll.u32 %v528_v23, 16 }
  0x3c   : > { %v751_v38 = vld [vmem:[%s414_s14] sm:$0xf]  ;;  %v631_v39 = vsel %vm2732_vm8, %v623_v20, %v630_v29  ;;  %v735_v40 = vsel %vm2642_vm2, %v632_v30, %v734_v16  ;;  %v647_v41 = vor.u32 %v645_v25, %v644_v32  ;;  %v649_v42 = vrot.slane %v644_v32, 4  ;;  %v752_v44 = vld [vmem:[%s414_s14 + $0x4] sm:$0xf] }
  0x3d   : > { %v744_v43 = vld [vmem:[#allocation2 + $0x60] sm:$0xf]  ;;  %733 = vst.msk [vmem:[#allocation2 + $0x4c] sm:$0xf] %vm692_vm5, %v631_v39  ;;  %736 = vst [vmem:[#allocation2 + $0x50] sm:$0x1] %v735_v40  ;;  %v738_v45 = vsel %vm2725_vm7, %v639_v34, %v737_v31  ;;  %v656_v46 = vor.u32 %v654_v27, %v653_v36 }
  0x3e   : > { %v657_v47 = vrot.slane %v653_v36, 4  ;;  %v661_v48 = vrot.slane %v659_v37, 7  ;;  %v780_v49 = vld [vmem:[%s431_s19] sm:$0xf]  ;;  %739 = vst [vmem:[#allocation2 + $0x54] sm:$0xf] %v738_v45  ;;  %v648_v50 = vsel %vm2732_vm8, %v640_v35, %v647_v41  ;;  %v742_v51 = vsel %vm2642_vm2, %v649_v42, %v741_v33 }
  0x3f   : > { %v748_v53 = vld [vmem:[#allocation2 + $0x68] sm:$0x1]  ;;  %v754_v54 = vshrl.u32 %v751_v38, 16  ;;  %v781_v55 = vld [vmem:[%s431_s19 + $0x4] sm:$0xf]  ;;  %v745_v57 = vsel %vm2725_vm7, %v656_v46, %v744_v43  ;;  %v757_v59 = vshll.u32 %v751_v38, 16 }
  0x40   : > { %740 = vst.msk [vmem:[#allocation2 + $0x58] sm:$0xf] %vm692_vm5, %v648_v50  ;;  %743 = vst [vmem:[#allocation2 + $0x5c] sm:$0x1] %v742_v51  ;;  %v666_v58 = vrot.slane %v661_v48, 4  ;;  %v762_v60 = vshrl.u32 %v752_v44, 16  ;;  %v664_v61 = vor.u32 %v662_v52, %v661_v48 }
  0x41   : > { %746 = vst [vmem:[#allocation2 + $0x60] sm:$0xf] %v745_v57  ;;  %v756_v62 = vrot.slane %v754_v54, 7  ;;  %v765_v0 = vshll.u32 %v752_v44, 16  ;;  %v783_v2 = vshrl.u32 %v780_v49, 16  ;;  %v786_v6 = vshll.u32 %v780_v49, 16 }
  0x42   : > { %v749_v3 = vsel %vm2642_vm2, %v666_v58, %v748_v53  ;;  %v773_v4 = vld [vmem:[#allocation2] sm:$0xf]  ;;  %v764_v5 = vrot.slane %v762_v60, 7  ;;  %v791_v7 = vshrl.u32 %v781_v55, 16  ;;  %v665_v8 = vsel %vm2732_vm8, %v657_v47, %v664_v61  ;;  %v777_v11 = vld [vmem:[#allocation2 + $0x8] sm:$0x1] }
  0x43   : > { %750 = vst [vmem:[#allocation2 + $0x68] sm:$0x1] %v749_v3  ;;  %v759_v9 = vor.u32 %v757_v59, %v756_v62  ;;  %v760_v10 = vrot.slane %v756_v62, 4  ;;  %v785_v12 = vrot.slane %v783_v2, 7  ;;  %747 = vst.msk [vmem:[#allocation2 + $0x64] sm:$0xf] %vm692_vm5, %v665_v8 }
  0x44   : > { %v767_v13 = vor.u32 %v765_v0, %v764_v5  ;;  %v769_v14 = vrot.slane %v764_v5, 4  ;;  %v803_v15 = vld [vmem:[#allocation2 + $0x6c] sm:$0xf]  ;;  %v793_v16 = vrot.slane %v791_v7, 7  ;;  %v794_v17 = vshll.u32 %v781_v55, 16 }
  0x45   : > { %v774_v18 = vsel %vm2725_vm7, %v759_v9, %v773_v4  ;;  %v788_v19 = vor.u32 %v786_v6, %v785_v12  ;;  %v789_v20 = vrot.slane %v785_v12, 4  ;;  %v807_v21 = vld [vmem:[#allocation2 + $0x74] sm:$0x1]  ;;  %813 = sbr.rel (%p2336_p10) target bundleno = 81 (0x51), region = 52 }
  0x46   : > { %775 = vst [vmem:[#allocation2] sm:$0xf] %v774_v18  ;;  %v768_v22 = vsel %vm2732_vm8, %v760_v10, %v767_v13  ;;  %v778_v23 = vsel %vm2642_vm2, %v769_v14, %v777_v11  ;;  %v796_v24 = vor.u32 %v794_v17, %v793_v16  ;;  %v798_v25 = vrot.slane %v793_v16, 4 }
  0x47   : > { %776 = vst.msk [vmem:[#allocation2 + $0x4] sm:$0xf] %vm692_vm5, %v768_v22  ;;  %779 = vst [vmem:[#allocation2 + $0x8] sm:$0x1] %v778_v23  ;;  %v804_v26 = vsel %vm2725_vm7, %v788_v19, %v803_v15 }
  0x48   : > { %805 = vst [vmem:[#allocation2 + $0x6c] sm:$0xf] %v804_v26  ;;  %v797_v27 = vsel %vm2732_vm8, %v789_v20, %v796_v24  ;;  %v808_v28 = vsel %vm2642_vm2, %v798_v25, %v807_v21 }
  0x49   : > { %806 = vst.msk [vmem:[#allocation2 + $0x70] sm:$0xf] %vm692_vm5, %v797_v27  ;;  %809 = vst [vmem:[#allocation2 + $0x74] sm:$0x1] %v808_v28 }
  0x4a   : > { %v2564_v32 = vmov 0  }
  0x4b   : > { %817 = vst.msk [vmem:[#allocation2 + $0x4] sm:$0xf] %vm692_vm5, %v2564_v32 }
  0x4d   : > { %v814_v29 = vld [vmem:[#allocation2] sm:$0xf] }
  0x4e   : > { %v818_v30 = vld [vmem:[#allocation2 + $0x8] sm:$0x1]  ;;  %v815_v31 = vsel %vm2725_vm7, 0, %v814_v29 }
  0x4f   : > { %v819_v63 = vsel %vm2642_vm2, 0, %v818_v30  ;;  %816 = vst [vmem:[#allocation2] sm:$0xf] %v815_v31 }
  0x50   : > { %820 = vst [vmem:[#allocation2 + $0x8] sm:$0x1] %v819_v63 }
  0x51 PF: > { %p2337_p11 = scmp.ne.s32.totalorder %s2546_s24, 1 }
  0x53   : > { %824 = sbr.rel (%p2337_p11) target bundleno = 91 (0x5b), region = 56 }
  0x58   : > { %v825_v33 = vld [vmem:[#allocation2 + $0x6c] sm:$0xf]  ;;  %v829_v34 = vld [vmem:[#allocation2 + $0x74] sm:$0x1]  ;;  %v2565_v36 = vmov 0  }
  0x59   : > { %v826_v35 = vsel %vm2725_vm7, 0, %v825_v33  ;;  %828 = vst.msk [vmem:[#allocation2 + $0x70] sm:$0xf] %vm692_vm5, %v2565_v36  ;;  %v830_v37 = vsel %vm2642_vm2, 0, %v829_v34 }
  0x5a   : > { %827 = vst [vmem:[#allocation2 + $0x6c] sm:$0xf] %v826_v35  ;;  %831 = vst [vmem:[#allocation2 + $0x74] sm:$0x1] %v830_v37 }
  0x5b PF: > { %v1928_v38 = vld [vmem:[%s3375_s4] sm:$0x3]  ;;  %vm1961_vm9 = vcmask 1041408   ;;  %v866_v39 = vlaneseq  ;;  %v902_v41 = vld [vmem:[#allocation2 + $0x8] sm:$0x1]  ;;  %vm970_vm10 = vcmask 1046528  }
  0x5c   : > { %2478 = vmatprep.subr.msk.bf16.mxu0 %vm1961_vm9, %v1928_v38  ;;  %2479 = vmatprep.subr.msk.bf16.mxu1 %vm1961_vm9, %v1928_v38  ;;  %v1963_v40 = vsel %vm1961_vm9, %v1928_v38, 0  ;;  %v2392_v56 = vld [vmem:[#allocation2] sm:$0xff]   ;;  %v910_v44 = vunpack.c.l.bf16 %v902_v41  ;;  %vm1111_vm11 = vcmask 1045504   ;;  %v1184_v46 = vld [vmem:[#allocation2 + $0xc] sm:$0xff]   ;;  %v1252_v47 = vld [vmem:[#allocation2 + $0x14] sm:$0x1] }
  0x5d   : > { %2459 = vmatpush3.bf16.msra.mxu0 %v1963_v40  ;;  %2477 = vmatpush3.bf16.msra.mxu1 %v1963_v40  ;;  %v2393_v42 = vunpack.c.l.bf16 %v2392_v56  ;;  %v2394_v1 = vunpack.c.h.bf16 %v2392_v56  ;;  %v2866_v43 = vshrl.u32 %v866_v39, 7  ;;  %v1043_v45 = vld [vmem:[#allocation2] sm:$0xe]  ;;  %v1200_v50 = vunpack.c.l.bf16 %v1184_v46  ;;  %v1392_v53 = vld [vmem:[#allocation2 + $0xc] sm:$0xe]  ;;  %v2424_v54 = vld [vmem:[#allocation2 + $0x18] sm:$0xff]  }
  0x5e   : > { %v2871_v48 = vld [vmem:[%s3374_s3] sm:$0xff]  ;;  %v1051_v49 = vunpack.c.l.bf16 %v1043_v45  ;;  %v1201_v51 = vunpack.c.h.bf16 %v1184_v46  ;;  %v1260_v52 = vunpack.c.l.bf16 %v1252_v47  ;;  %v1400_v61 = vunpack.c.l.bf16 %v1392_v53  ;;  %v2925_v41 = vld [vmem:[%s3374_s3 + $0x8] ss:$0 sm:$0xff] }
  0x5f   : > { %v868_v55 = vsub.s32 0, %v2866_v43  ;;  %v920_v57 = vsub.s32 1, %v2866_v43  ;;  %v1061_v58 = vsub.s32 2, %v2866_v43  ;;  %v1218_v59 = vsub.s32 3, %v2866_v43  ;;  %v1601_v56 = vld [vmem:[#allocation2 + $0x20] sm:$0x1] }
  0x60   : > { %v1270_v60 = vsub.s32 4, %v2866_v43  ;;  %v1410_v62 = vsub.s32 5, %v2866_v43  ;;  %v2879_v0 = vunpack.c.l.bf16 %v2424_v54  ;;  %v2899_v8 = vunpack.c.h.bf16 %v2424_v54 }
  0x61   : > { %v2882_v2 = vrot.slane %v2871_v48, %v868_v55  ;;  %v2885_v3 = vrot.slane %v2871_v48, %v920_v57  ;;  %v2888_v4 = vrot.slane %v2871_v48, %v1061_v58  ;;  %v2891_v5 = vrot.slane %v2871_v48, %v1218_v59  ;;  %v2440_v57 = vld [vmem:[#allocation2 + $0x30] sm:$0xff]  }
  0x62   : > { %v2894_v6 = vrot.slane %v2871_v48, %v1270_v60  ;;  %v2897_v7 = vrot.slane %v2871_v48, %v1410_v62  ;;  %v1567_v9 = vsub.s32 6, %v2866_v43  ;;  %v1609_v55 = vunpack.c.l.bf16 %v1601_v56 }
  0x63   : > { %v870_v10 = vmul.f32 %v2393_v42, %v2882_v2  ;;  %v871_v11 = vmul.f32 %v2394_v1, %v2882_v2  ;;  %v922_v12 = vmul.f32 %v2393_v42, %v2885_v3  ;;  %v923_v13 = vmul.f32 %v2394_v1, %v2885_v3 }
  0x64   : > { %v924_v14 = vmul.f32 %v2885_v3, %v910_v44  ;;  %v1063_v15 = vmul.f32 %v2888_v4, %v1051_v49  ;;  %v1064_v16 = vmul.f32 %v2394_v1, %v2888_v4  ;;  %v1065_v17 = vmul.f32 %v2888_v4, %v910_v44 }
  0x65   : > { %v971_v18 = vrot.slane %v922_v12, 1  ;;  %v972_v19 = vrot.slane %v923_v13, 1  ;;  %v1220_v20 = vmul.f32 %v2891_v5, %v1200_v50  ;;  %v1221_v21 = vmul.f32 %v2891_v5, %v1201_v51 }
  0x66   : > { %v974_v22 = vrot.slane %v924_v14, 1  ;;  %v1112_v23 = vrot.slane %v1063_v15, 2  ;;  %v1113_v24 = vrot.slane %v1064_v16, 2  ;;  %v1115_v25 = vrot.slane %v1065_v17, 2 }
  0x67   : > { %v973_v26 = vsel %vm970_vm10, %v971_v18, %v972_v19  ;;  %v1272_v27 = vmul.f32 %v2894_v6, %v1200_v50  ;;  %v1273_v28 = vmul.f32 %v2894_v6, %v1201_v51  ;;  %v1274_v29 = vmul.f32 %v2894_v6, %v1260_v52 }
  0x68   : > { %v975_v30 = vsel %vm970_vm10, %v972_v19, %v974_v22  ;;  %v1027_v31 = vadd.f32 %v973_v26, %v870_v10  ;;  %v1114_v32 = vsel %vm1111_vm11, %v1112_v23, %v1113_v24  ;;  %v1116_v63 = vsel %vm1111_vm11, %v1113_v24, %v1115_v25  ;;  %v906_v22 = vld [vmem:[#allocation2 + $0x38] sm:$0x1]  ;;  %v1047_v26 = vld [vmem:[#allocation2 + $0x30] sm:$0xe] }
  0x69   : > { %v1028_v33 = vadd.f32 %v975_v30, %v871_v11  ;;  %v1320_v34 = vrot.slane %v1272_v27, 1  ;;  %v1321_v35 = vrot.slane %v1273_v28, 1  ;;  %v1323_v36 = vrot.slane %v1274_v29, 1 }
  0x6a   : > { %v1168_v37 = vadd.f32 %v1114_v32, %v1027_v31  ;;  %v1412_v38 = vmul.f32 %v2897_v7, %v1400_v61  ;;  %v1413_v39 = vmul.f32 %v2897_v7, %v1201_v51  ;;  %v1414_v40 = vmul.f32 %v2897_v7, %v1260_v52  ;;  %v1741_v51 = vld [vmem:[#allocation2 + $0x18] sm:$0xe] }
  0x6b   : > { %v1169_v42 = vadd.f32 %v1116_v63, %v1028_v33  ;;  %v1322_v1 = vsel %vm970_vm10, %v1320_v34, %v1321_v35  ;;  %v1324_v44 = vsel %vm970_vm10, %v1321_v35, %v1323_v36  ;;  %v2930_v45 = vrot.slane %v2871_v48, %v1567_v9 }
  0x6c   : > { %v1236_v46 = vadd.f32 %v1220_v20, %v1168_v37  ;;  %v1460_v47 = vrot.slane %v1412_v38, 2  ;;  %v1461_v49 = vrot.slane %v1413_v39, 2  ;;  %v1463_v50 = vrot.slane %v1414_v40, 2  ;;  %v1192_v38 = vld [vmem:[#allocation2 + $0x3c] sm:$0xff]  }
  0x6d   : > { %v1237_v52 = vadd.f32 %v1221_v21, %v1169_v42  ;;  %v1569_v53 = vmul.f32 %v2879_v0, %v2930_v45  ;;  %v1570_v54 = vmul.f32 %v2899_v8, %v2930_v45  ;;  %v1619_v61 = vsub.s32 7, %v2866_v43 }
  0x6e   : > { %v1376_v58 = vadd.f32 %v1322_v1, %v1236_v46  ;;  %v1462_v59 = vsel %vm1111_vm11, %v1460_v47, %v1461_v49  ;;  %v1464_v60 = vsel %vm1111_vm11, %v1461_v49, %v1463_v50  ;;  %v1749_v9 = vunpack.c.l.bf16 %v1741_v51  ;;  %v2971_v1 = vld [vmem:[%s3376_s5] ss:$0 sm:$0xff] }
  0x6f   : > { %v1377_v62 = vadd.f32 %v1324_v44, %v1237_v52  ;;  %v1762_v10 = vmul.f32 %v2899_v8, %v2925_v41  ;;  %v1763_v11 = vmul.f32 %v2925_v41, %v1609_v55  ;;  %v2943_v13 = vrot.slane %v2871_v48, %v1619_v61 }
  0x70   : > { %v1516_v12 = vadd.f32 %v1462_v59, %v1376_v58  ;;  %v2945_v14 = vunpack.c.l.bf16 %v2440_v57  ;;  %v1761_v16 = vmul.f32 %v2925_v41, %v1749_v9  ;;  %v2954_v25 = vunpack.c.h.bf16 %v2440_v57  ;;  %v1256_v9 = vld [vmem:[#allocation2 + $0x44] sm:$0x1] }
  0x71   : > { %v1517_v15 = vadd.f32 %v1464_v60, %v1377_v62  ;;  %v1810_v17 = vrot.slane %v1762_v10, 2  ;;  %v1812_v18 = vrot.slane %v1763_v11, 2  ;;  %v1621_v43 = vmul.f32 %v2879_v0, %v2943_v13 }
  0x72   : > { %v1585_v19 = vadd.f32 %v1569_v53, %v1516_v12  ;;  %v1622_v20 = vmul.f32 %v2899_v8, %v2943_v13  ;;  %v1623_v21 = vmul.f32 %v2943_v13, %v1609_v55  ;;  %v1809_v48 = vrot.slane %v1761_v16, 2  ;;  %v1396_v16 = vld [vmem:[#allocation2 + $0x3c] sm:$0xe] }
  0x73   : > { %v1586_v23 = vadd.f32 %v1570_v54, %v1517_v15  ;;  %v1813_v24 = vsel %vm1111_vm11, %v1810_v17, %v1812_v18  ;;  %v1669_v27 = vrot.slane %v1621_v43, 1  ;;  %v878_v30 = vmul.f32 %v2945_v14, %v2882_v2 }
  0x74   : > { %v1670_v28 = vrot.slane %v1622_v20, 1  ;;  %v1672_v29 = vrot.slane %v1623_v21, 1  ;;  %v1811_v31 = vsel %vm1111_vm11, %v1809_v48, %v1810_v17  ;;  %v879_v32 = vmul.f32 %v2954_v25, %v2882_v2  ;;  %v2447_v48 = vld [vmem:[#allocation2 + $0x48] sm:$0xff]  }
  0x75   : > { %v914_v63 = vunpack.c.l.bf16 %v906_v22  ;;  %v934_v33 = vmul.f32 %v2945_v14, %v2885_v3  ;;  %vm1936_vm12 = vcmask 31744   ;;  %v935_v36 = vmul.f32 %v2954_v25, %v2885_v3 }
  0x76   : > { %v1671_v34 = vsel %vm970_vm10, %v1669_v27, %v1670_v28  ;;  %v1673_v35 = vsel %vm970_vm10, %v1670_v28, %v1672_v29  ;;  %v1055_v37 = vunpack.c.l.bf16 %v1047_v26  ;;  %v1076_v47 = vmul.f32 %v2954_v25, %v2888_v4  ;;  %v1605_v29 = vld [vmem:[#allocation2 + $0x50] sm:$0x1] }
  0x77   : > { %v1725_v39 = vadd.f32 %v1671_v34, %v1585_v19  ;;  %v1726_v40 = vadd.f32 %v1673_v35, %v1586_v23  ;;  %v936_v56 = vmul.f32 %v2885_v3, %v914_v63  ;;  %v991_v42 = vrot.slane %v934_v33, 1 }
  0x78   : > { %v992_v44 = vrot.slane %v935_v36, 1  ;;  %v1075_v46 = vmul.f32 %v2888_v4, %v1055_v37  ;;  %v1077_v49 = vmul.f32 %v2888_v4, %v914_v63  ;;  %v1208_v53 = vunpack.c.l.bf16 %v1192_v38 }
  0x79   : > { %v1865_v50 = vadd.f32 %v1811_v31, %v1725_v39  ;;  %v1866_v51 = vadd.f32 %v1813_v24, %v1726_v40  ;;  %v994_v52 = vrot.slane %v936_v56, 1  ;;  %v1133_v57 = vrot.slane %v1076_v47, 2  ;;  %v1745_v47 = vld [vmem:[#allocation2 + $0x48] sm:$0xe] }
  0x7a   : > { %v993_v54 = vsel %vm970_vm10, %v991_v42, %v992_v44  ;;  %v1132_v55 = vrot.slane %v1075_v46, 2  ;;  %v1135_v58 = vrot.slane %v1077_v49, 2  ;;  %v1209_v15 = vunpack.c.h.bf16 %v1192_v38 }
  0x7b   : > { %v1888_v59 = vadd.f32 %v2971_v1, %v1865_v50  ;;  %v1889_v60 = vadd.f32 %v2971_v1, %v1866_v51  ;;  %v995_v61 = vsel %vm970_vm10, %v992_v44, %v994_v52  ;;  %v1035_v62 = vadd.f32 %v993_v54, %v878_v30 }
  0x7c   : > { %v1036_v10 = vadd.f32 %v995_v61, %v879_v32  ;;  %v1134_v11 = vsel %vm1111_vm11, %v1132_v55, %v1133_v57  ;;  %v1136_v12 = vsel %vm1111_vm11, %v1133_v57, %v1135_v58  ;;  %v1228_v43 = vmul.f32 %v2891_v5, %v1208_v53  ;;  %v836_v58 = vld [vmem:[#allocation2 + $0xc] sm:$0xff]  }
  0x7d   : > { %v1904_v17 = vmax.f32 %v1888_v59, 0.0  ;;  %v1905_v18 = vmax.f32 %v1889_v60, 0.0  ;;  %v1176_v19 = vadd.f32 %v1134_v11, %v1035_v62  ;;  %v1229_v21 = vmul.f32 %v2891_v5, %v1209_v15 }
  0x7e   : > { %v1177_v20 = vadd.f32 %v1136_v12, %v1036_v10  ;;  %v1264_v22 = vunpack.c.l.bf16 %v1256_v9  ;;  %v1284_v23 = vmul.f32 %v2894_v6, %v1208_v53  ;;  %v1285_v27 = vmul.f32 %v2894_v6, %v1209_v15 }
  0x7f   : > { %v1920_v24 = vpack.c.bf16 %v1905_v18, %v1904_v17  ;;  %v1244_v26 = vadd.f32 %v1228_v43, %v1176_v19  ;;  %v1404_v28 = vunpack.c.l.bf16 %v1396_v16  ;;  %v1425_v63 = vmul.f32 %v2897_v7, %v1209_v15  ;;  %v903_v19 = vld [vmem:[#allocation2 + $0x14] sm:$0x1] }
  0x80   : > { %v1245_v30 = vadd.f32 %v1229_v21, %v1177_v20  ;;  %v1286_v31 = vmul.f32 %v2894_v6, %v1264_v22  ;;  %v1340_v32 = vrot.slane %v1284_v23, 1  ;;  %v1341_v33 = vrot.slane %v1285_v27, 1  ;;  %v1044_v27 = vld [vmem:[#allocation2 + $0xc] sm:$0xe] }
  0x81   : > { %2460 = vmatprep.mubr.msk.bf16.mxu0 %vm1936_vm12, %v1920_v24  ;;  %v1424_v34 = vmul.f32 %v2897_v7, %v1404_v28  ;;  %v1426_v35 = vmul.f32 %v2897_v7, %v1264_v22  ;;  %v2992_v36 = vunpack.c.l.bf16 %v2447_v48  ;;  %v1481_v38 = vrot.slane %v1425_v63, 2 }
  0x82   : > { %v1343_v37 = vrot.slane %v1286_v31, 1  ;;  %v2994_v39 = vunpack.c.h.bf16 %v2447_v48  ;;  %v1613_v40 = vunpack.c.l.bf16 %v1605_v29  ;;  %v1342_v56 = vsel %vm970_vm10, %v1340_v32, %v1341_v33 }
  0x83   : > { %v1480_v42 = vrot.slane %v1424_v34, 2  ;;  %v1483_v44 = vrot.slane %v1426_v35, 2  ;;  %v1577_v46 = vmul.f32 %v2992_v36, %v2930_v45  ;;  %v1384_v50 = vadd.f32 %v1342_v56, %v1244_v26 }
  0x84   : > { %v1344_v49 = vsel %vm970_vm10, %v1341_v33, %v1343_v37  ;;  %v1578_v51 = vmul.f32 %v2994_v39, %v2930_v45  ;;  %v1633_v52 = vmul.f32 %v2992_v36, %v2943_v13  ;;  %v1634_v57 = vmul.f32 %v2994_v39, %v2943_v13 }
  0x85   : > { %v1385_v53 = vadd.f32 %v1344_v49, %v1245_v30  ;;  %v1482_v54 = vsel %vm1111_vm11, %v1480_v42, %v1481_v38  ;;  %v1484_v55 = vsel %vm1111_vm11, %v1481_v38, %v1483_v44  ;;  %v1635_v60 = vmul.f32 %v2943_v13, %v1613_v40 }
  0x86   : > { %v1524_v59 = vadd.f32 %v1482_v54, %v1384_v50  ;;  %v1689_v61 = vrot.slane %v1633_v52, 1  ;;  %v1753_v62 = vunpack.c.l.bf16 %v1745_v47  ;;  %v1690_v10 = vrot.slane %v1634_v57, 1  ;;  %v1253_v57 = vld [vmem:[#allocation2 + $0x20] sm:$0x1] }
  0x87   : > { %v1525_v9 = vadd.f32 %v1484_v55, %v1385_v53  ;;  %v1774_v11 = vmul.f32 %v2994_v39, %v2925_v41  ;;  %v1775_v12 = vmul.f32 %v2925_v41, %v1613_v40  ;;  %v1692_v16 = vrot.slane %v1635_v60, 1 }
  0x88   : > { %v1593_v15 = vadd.f32 %v1577_v46, %v1524_v59  ;;  %v1773_v17 = vmul.f32 %v2925_v41, %v1753_v62  ;;  %v852_v18 = vunpack.c.l.bf16 %v836_v58  ;;  %v1691_v20 = vsel %vm970_vm10, %v1689_v61, %v1690_v10  ;;  %v1393_v62 = vld [vmem:[#allocation2 + $0x18] sm:$0xe] }
  0x89   : > { %v1594_v43 = vadd.f32 %v1578_v51, %v1525_v9  ;;  %v1830_v21 = vrot.slane %v1774_v11, 2  ;;  %v1832_v22 = vrot.slane %v1775_v12, 2  ;;  %v1693_v23 = vsel %vm970_vm10, %v1690_v10, %v1692_v16 }
  0x8a   : > { %v1733_v48 = vadd.f32 %v1691_v20, %v1593_v15  ;;  %v1829_v24 = vrot.slane %v1773_v17, 2  ;;  %v853_v26 = vunpack.c.h.bf16 %v836_v58  ;;  %v872_v30 = vmul.f32 %v2882_v2, %v852_v18 }
  0x8b   : > { %v1734_v28 = vadd.f32 %v1693_v23, %v1594_v43  ;;  %v1833_v29 = vsel %vm1111_vm11, %v1830_v21, %v1832_v22  ;;  %v911_v31 = vunpack.c.l.bf16 %v903_v19  ;;  %v925_v33 = vmul.f32 %v2885_v3, %v852_v18  ;;  %v1535_v22 = vld [vmem:[#allocation2 + $0x24] sm:$0xff]  }
  0x8c   : > { %v1831_v32 = vsel %vm1111_vm11, %v1829_v24, %v1830_v21  ;;  %v873_v63 = vmul.f32 %v2882_v2, %v853_v26  ;;  %v926_v34 = vmul.f32 %v2885_v3, %v853_v26  ;;  %v1052_v40 = vunpack.c.l.bf16 %v1044_v27  ;;  %v1602_v27 = vld [vmem:[#allocation2 + $0x2c] sm:$0x1] }
  0x8d   : > { %v1873_v35 = vadd.f32 %v1831_v32, %v1733_v48  ;;  %v1874_v37 = vadd.f32 %v1833_v29, %v1734_v28  ;;  %v927_v38 = vmul.f32 %v2885_v3, %v911_v31  ;;  %v976_v56 = vrot.slane %v925_v33, 1 }
  0x8e   : > { %v977_v42 = vrot.slane %v926_v34, 1  ;;  %v1067_v44 = vmul.f32 %v2888_v4, %v853_v26  ;;  %v1068_v46 = vmul.f32 %v2888_v4, %v911_v31  ;;  %v1066_v51 = vmul.f32 %v2888_v4, %v1052_v40 }
  0x8f   : > { %v1896_v47 = vadd.f32 %v2971_v1, %v1873_v35  ;;  %v1897_v49 = vadd.f32 %v2971_v1, %v1874_v37  ;;  %v979_v50 = vrot.slane %v927_v38, 1  ;;  %v1222_v55 = vmul.f32 %v2879_v0, %v2891_v5 }
  0x90   : > { %v978_v52 = vsel %vm970_vm10, %v976_v56, %v977_v42  ;;  %v1118_v53 = vrot.slane %v1067_v44, 2  ;;  %v1120_v54 = vrot.slane %v1068_v46, 2  ;;  %v1117_v10 = vrot.slane %v1066_v51, 2 }
  0x91   : > { %v1912_v58 = vmax.f32 %v1896_v47, 0.0  ;;  %v1913_v59 = vmax.f32 %v1897_v49, 0.0  ;;  %v980_v60 = vsel %vm970_vm10, %v977_v42, %v979_v50  ;;  %v1029_v61 = vadd.f32 %v978_v52, %v872_v30  ;;  %v1742_v47 = vld [vmem:[#allocation2 + $0x24] sm:$0xe] }
  0x92   : > { %v1030_v9 = vadd.f32 %v980_v60, %v873_v63  ;;  %v1121_v11 = vsel %vm1111_vm11, %v1118_v53, %v1120_v54  ;;  %v1223_v12 = vmul.f32 %v2899_v8, %v2891_v5  ;;  %v1261_v16 = vunpack.c.l.bf16 %v1253_v57 }
  0x93   : > { %v1924_v15 = vpack.c.bf16 %v1913_v59, %v1912_v58  ;;  %v1275_v17 = vmul.f32 %v2879_v0, %v2894_v6  ;;  %v1276_v18 = vmul.f32 %v2899_v8, %v2894_v6  ;;  %v1119_v19 = vsel %vm1111_vm11, %v1117_v10, %v1118_v53  ;;  %v844_v53 = vld [vmem:[#allocation2 + $0x3c] sm:$0xff]  }
  0x94   : > { %v1171_v43 = vadd.f32 %v1121_v11, %v1030_v9  ;;  %v1401_v20 = vunpack.c.l.bf16 %v1393_v62  ;;  %v1416_v21 = vmul.f32 %v2899_v8, %v2897_v7  ;;  %v1170_v23 = vadd.f32 %v1119_v19, %v1029_v61  ;;  %v907_v19 = vld [vmem:[#allocation2 + $0x44] sm:$0x1] }
  0x95   : > { %2468 = vmatprep.mubr.msk.bf16.mxu1 %vm1936_vm12, %v1924_v15  ;;  %v1277_v48 = vmul.f32 %v2894_v6, %v1261_v16  ;;  %v1325_v24 = vrot.slane %v1275_v17, 1  ;;  %v1326_v26 = vrot.slane %v1276_v18, 1  ;;  %v1417_v30 = vmul.f32 %v2897_v7, %v1261_v16 }
  0x96   : > { %v1239_v28 = vadd.f32 %v1223_v12, %v1171_v43  ;;  %v1415_v29 = vmul.f32 %v2897_v7, %v1401_v20  ;;  %v1466_v31 = vrot.slane %v1416_v21, 2  ;;  %v1238_v32 = vadd.f32 %v1222_v55, %v1170_v23  ;;  %v1048_v23 = vld [vmem:[#allocation2 + $0x3c] sm:$0xe] }
  0x97   : > { %v1327_v63 = vsel %vm970_vm10, %v1325_v24, %v1326_v26  ;;  %v1328_v33 = vrot.slane %v1277_v48, 1  ;;  %v1551_v34 = vunpack.c.l.bf16 %v1535_v22  ;;  %v1468_v37 = vrot.slane %v1417_v30, 2 }
  0x98   : > { %v1465_v35 = vrot.slane %v1415_v29, 2  ;;  %v1552_v38 = vunpack.c.h.bf16 %v1535_v22  ;;  %v1610_v40 = vunpack.c.l.bf16 %v1602_v27  ;;  %v1378_v42 = vadd.f32 %v1327_v63, %v1238_v32 }
  0x99   : > { %v1329_v56 = vsel %vm970_vm10, %v1326_v26, %v1328_v33  ;;  %v1571_v44 = vmul.f32 %v2930_v45, %v1551_v34  ;;  %v1624_v46 = vmul.f32 %v2943_v13, %v1551_v34  ;;  %v1469_v51 = vsel %vm1111_vm11, %v1466_v31, %v1468_v37 }
  0x9a   : > { %v1379_v49 = vadd.f32 %v1329_v56, %v1239_v28  ;;  %v1467_v50 = vsel %vm1111_vm11, %v1465_v35, %v1466_v31  ;;  %v1572_v52 = vmul.f32 %v2930_v45, %v1552_v38  ;;  %v1625_v55 = vmul.f32 %v2943_v13, %v1552_v38 }
  0x9b   : > { %v1518_v54 = vadd.f32 %v1467_v50, %v1378_v42  ;;  %v1626_v57 = vmul.f32 %v2943_v13, %v1610_v40  ;;  %v1674_v58 = vrot.slane %v1624_v46, 1  ;;  %v1750_v60 = vunpack.c.l.bf16 %v1742_v47  ;;  %v1257_v47 = vld [vmem:[#allocation2 + $0x50] sm:$0x1] }
  0x9c   : > { %v1519_v59 = vadd.f32 %v1469_v51, %v1379_v49  ;;  %v1765_v61 = vmul.f32 %v2925_v41, %v1552_v38  ;;  %v1766_v62 = vmul.f32 %v2925_v41, %v1610_v40  ;;  %v1675_v10 = vrot.slane %v1625_v55, 1 }
  0x9d   : > { %v1587_v9 = vadd.f32 %v1571_v44, %v1518_v54  ;;  %v1677_v11 = vrot.slane %v1626_v57, 1  ;;  %v860_v12 = vunpack.c.l.bf16 %v844_v53  ;;  %v1764_v16 = vmul.f32 %v2925_v41, %v1750_v60 }
  0x9e   : > { %v1588_v15 = vadd.f32 %v1572_v52, %v1519_v59  ;;  %v1815_v17 = vrot.slane %v1765_v61, 2  ;;  %v1817_v18 = vrot.slane %v1766_v62, 2  ;;  %v1676_v43 = vsel %vm970_vm10, %v1674_v58, %v1675_v10  ;;  %v1397_v62 = vld [vmem:[#allocation2 + $0x48] sm:$0xe] }
  0x9f   : > { %v1678_v20 = vsel %vm970_vm10, %v1675_v10, %v1677_v11  ;;  %v861_v21 = vunpack.c.h.bf16 %v844_v53  ;;  %v880_v22 = vmul.f32 %v2882_v2, %v860_v12  ;;  %v1727_v48 = vadd.f32 %v1676_v43, %v1587_v9 }
  0xa0   : > { %v1728_v24 = vadd.f32 %v1678_v20, %v1588_v15  ;;  %v1814_v26 = vrot.slane %v1764_v16, 2  ;;  %v1818_v27 = vsel %vm1111_vm11, %v1815_v17, %v1817_v18  ;;  %v915_v29 = vunpack.c.l.bf16 %v907_v19  ;;  %v1543_v19 = vld [vmem:[#allocation2 + $0x54] sm:$0xff]  }
  0xa1   : > { %v881_v28 = vmul.f32 %v2882_v2, %v861_v21  ;;  %v937_v30 = vmul.f32 %v2885_v3, %v860_v12  ;;  %v938_v31 = vmul.f32 %v2885_v3, %v861_v21  ;;  %v1056_v33 = vunpack.c.l.bf16 %v1048_v23 }
  0xa2   : > { %v1816_v32 = vsel %vm1111_vm11, %v1814_v26, %v1815_v17  ;;  %v1868_v63 = vadd.f32 %v1818_v27, %v1728_v24  ;;  %v1079_v34 = vmul.f32 %v2888_v4, %v861_v21  ;;  %v939_v37 = vmul.f32 %v2885_v3, %v915_v29 }
  0xa3   : > { %v1867_v35 = vadd.f32 %v1816_v32, %v1727_v48  ;;  %v996_v38 = vrot.slane %v937_v30, 1  ;;  %v997_v40 = vrot.slane %v938_v31, 1  ;;  %v1078_v42 = vmul.f32 %v2888_v4, %v1056_v33  ;;  %v1606_v31 = vld [vmem:[#allocation2 + $0x5c] sm:$0x1] }
  0xa4   : > { %v1891_v56 = vadd.f32 %v2971_v1, %v1868_v63  ;;  %v1080_v44 = vmul.f32 %v2888_v4, %v915_v29  ;;  %v1138_v46 = vrot.slane %v1079_v34, 2  ;;  %v999_v51 = vrot.slane %v939_v37, 1 }
  0xa5   : > { %v1890_v49 = vadd.f32 %v2971_v1, %v1867_v35  ;;  %v998_v50 = vsel %vm970_vm10, %v996_v38, %v997_v40  ;;  %v1230_v52 = vmul.f32 %v2992_v36, %v2891_v5  ;;  %v1137_v55 = vrot.slane %v1078_v42, 2  ;;  %v1746_v35 = vld [vmem:[#allocation2 + $0x54] sm:$0xe] }
  0xa6   : > { %v1907_v53 = vmax.f32 %v1891_v56, 0.0  ;;  %v1037_v54 = vadd.f32 %v998_v50, %v880_v22  ;;  %v1140_v57 = vrot.slane %v1080_v44, 2  ;;  %v1000_v59 = vsel %vm970_vm10, %v997_v40, %v999_v51 }
  0xa7   : > { %v1906_v58 = vmax.f32 %v1890_v49, 0.0  ;;  %v1231_v60 = vmul.f32 %v2994_v39, %v2891_v5  ;;  %v1265_v61 = vunpack.c.l.bf16 %v1257_v47  ;;  %v1038_v9 = vadd.f32 %v1000_v59, %v881_v28 }
  0xa8   : > { %v1139_v10 = vsel %vm1111_vm11, %v1137_v55, %v1138_v46  ;;  %v1141_v11 = vsel %vm1111_vm11, %v1138_v46, %v1140_v57  ;;  %v1287_v12 = vmul.f32 %v2992_v36, %v2894_v6  ;;  %v1288_v17 = vmul.f32 %v2994_v39, %v2894_v6 }
  0xa9   : > { %v1921_v15 = vpack.c.bf16 %v1907_v53, %v1906_v58  ;;  %v1178_v16 = vadd.f32 %v1139_v10, %v1037_v54  ;;  %v1289_v18 = vmul.f32 %v2894_v6, %v1265_v61  ;;  %v1179_v43 = vadd.f32 %v1141_v11, %v1038_v9 }
  0xaa   : > { %v1345_v20 = vrot.slane %v1287_v12, 1  ;;  %v1405_v21 = vunpack.c.l.bf16 %v1397_v62  ;;  %v1428_v22 = vmul.f32 %v2994_v39, %v2897_v7  ;;  %v1346_v48 = vrot.slane %v1288_v17, 1  ;;  %v904_v62 = vld [vmem:[#allocation2 + $0x20] sm:$0x1] }
  0xab   : > { %2461 = vmatmul.mubr.msk.bf16.vlgmr.msra.gmra.mxu0 %vm1936_vm12, %v1921_v15  ;;  %v1246_v23 = vadd.f32 %v1230_v52, %v1178_v16  ;;  %v1348_v24 = vrot.slane %v1289_v18, 1  ;;  %v1429_v26 = vmul.f32 %v2897_v7, %v1265_v61  ;;  %v1247_v27 = vadd.f32 %v1231_v60, %v1179_v43 }
  0xac   : > { %v1427_v28 = vmul.f32 %v2897_v7, %v1405_v21  ;;  %v1486_v29 = vrot.slane %v1428_v22, 2  ;;  %v1559_v30 = vunpack.c.l.bf16 %v1543_v19  ;;  %v1347_v32 = vsel %vm970_vm10, %v1345_v20, %v1346_v48 }
  0xad   : > { %v1349_v63 = vsel %vm970_vm10, %v1346_v48, %v1348_v24  ;;  %v1488_v33 = vrot.slane %v1429_v26, 2  ;;  %v1560_v34 = vunpack.c.h.bf16 %v1543_v19  ;;  %v1386_v37 = vadd.f32 %v1347_v32, %v1246_v23  ;;  %v1045_v19 = vld [vmem:[#allocation2 + $0x18] sm:$0xe] }
  0xae   : > { %v1387_v38 = vadd.f32 %v1349_v63, %v1247_v27  ;;  %v1485_v40 = vrot.slane %v1427_v28, 2  ;;  %v1579_v56 = vmul.f32 %v2930_v45, %v1559_v30  ;;  %v1614_v46 = vunpack.c.l.bf16 %v1606_v31  ;;  %v1188_v27 = vld [vmem:[#allocation2 + $0x24] sm:$0xff]  }
  0xaf   : > { %v1489_v42 = vsel %vm1111_vm11, %v1486_v29, %v1488_v33  ;;  %v1580_v44 = vmul.f32 %v2930_v45, %v1560_v34  ;;  %v1636_v47 = vmul.f32 %v2943_v13, %v1559_v30  ;;  %v1637_v51 = vmul.f32 %v2943_v13, %v1560_v34 }
  0xb0   : > { %v1487_v49 = vsel %vm1111_vm11, %v1485_v40, %v1486_v29  ;;  %v1527_v50 = vadd.f32 %v1489_v42, %v1387_v38  ;;  %v1754_v52 = vunpack.c.l.bf16 %v1746_v35  ;;  %v1638_v54 = vmul.f32 %v2943_v13, %v1614_v46 }
  0xb1   : > { %v1526_v53 = vadd.f32 %v1487_v49, %v1386_v37  ;;  %v1694_v55 = vrot.slane %v1636_v47, 1  ;;  %v1777_v57 = vmul.f32 %v2925_v41, %v1560_v34  ;;  %v1695_v59 = vrot.slane %v1637_v51, 1 }
  0xb2   : > { %v1596_v58 = vadd.f32 %v1580_v44, %v1527_v50  ;;  %v1776_v60 = vmul.f32 %v2925_v41, %v1754_v52  ;;  %v1778_v61 = vmul.f32 %v2925_v41, %v1614_v46  ;;  %v1697_v10 = vrot.slane %v1638_v54, 1  ;;  %v1254_v46 = vld [vmem:[#allocation2 + $0x2c] sm:$0x1] }
  0xb3   : > { %v1595_v9 = vadd.f32 %v1579_v56, %v1526_v53  ;;  %v1835_v11 = vrot.slane %v1777_v57, 2  ;;  %v874_v12 = vmul.f32 %v2879_v0, %v2882_v2  ;;  %v1696_v15 = vsel %vm970_vm10, %v1694_v55, %v1695_v59  ;;  %v1394_v55 = vld [vmem:[#allocation2 + $0x24] sm:$0xe] }
  0xb4   : > { %v1834_v16 = vrot.slane %v1776_v60, 2  ;;  %v1837_v17 = vrot.slane %v1778_v61, 2  ;;  %v875_v18 = vmul.f32 %v2899_v8, %v2882_v2  ;;  %v1698_v43 = vsel %vm970_vm10, %v1695_v59, %v1697_v10 }
  0xb5   : > { %v1735_v20 = vadd.f32 %v1696_v15, %v1595_v9  ;;  %v912_v21 = vunpack.c.l.bf16 %v904_v62  ;;  %v928_v22 = vmul.f32 %v2879_v0, %v2885_v3  ;;  %v1736_v23 = vadd.f32 %v1698_v43, %v1596_v58 }
  0xb6   : > { %v1836_v48 = vsel %vm1111_vm11, %v1834_v16, %v1835_v11  ;;  %v1838_v24 = vsel %vm1111_vm11, %v1835_v11, %v1837_v17  ;;  %v929_v26 = vmul.f32 %v2899_v8, %v2885_v3  ;;  %v1053_v31 = vunpack.c.l.bf16 %v1045_v19  ;;  %v1603_v17 = vld [vmem:[#allocation2 + $0x38] sm:$0x1] }
  0xb7   : > { %v1875_v28 = vadd.f32 %v1836_v48, %v1735_v20  ;;  %v930_v29 = vmul.f32 %v2885_v3, %v912_v21  ;;  %v981_v30 = vrot.slane %v928_v22, 1  ;;  %v1876_v32 = vadd.f32 %v1838_v24, %v1736_v23 }
  0xb8   : > { %v982_v63 = vrot.slane %v929_v26, 1  ;;  %v1070_v33 = vmul.f32 %v2899_v8, %v2888_v4  ;;  %v1071_v0 = vmul.f32 %v2888_v4, %v912_v21  ;;  %v1069_v37 = vmul.f32 %v2888_v4, %v1053_v31 }
  0xb9   : > { %v1898_v34 = vadd.f32 %v2971_v1, %v1875_v28  ;;  %v984_v35 = vrot.slane %v930_v29, 1  ;;  %v1204_v38 = vunpack.c.l.bf16 %v1188_v27  ;;  %v1899_v40 = vadd.f32 %v2971_v1, %v1876_v32  ;;  %v1743_v29 = vld [vmem:[#allocation2 + $0x30] sm:$0xe] }
  0xba   : > { %v983_v56 = vsel %vm970_vm10, %v981_v30, %v982_v63  ;;  %v1123_v42 = vrot.slane %v1070_v33, 2  ;;  %v1125_v44 = vrot.slane %v1071_v0, 2  ;;  %v1122_v8 = vrot.slane %v1069_v37, 2 }
  0xbb   : > { %v1914_v47 = vmax.f32 %v1898_v34, 0.0  ;;  %v985_v49 = vsel %vm970_vm10, %v982_v63, %v984_v35  ;;  %v1031_v50 = vadd.f32 %v983_v56, %v874_v12  ;;  %v1915_v51 = vmax.f32 %v1899_v40, 0.0 }
  0xbc   : > { %v1032_v52 = vadd.f32 %v985_v49, %v875_v18  ;;  %v1126_v53 = vsel %vm1111_vm11, %v1123_v42, %v1125_v44  ;;  %v1205_v54 = vunpack.c.h.bf16 %v1188_v27  ;;  %v1124_v57 = vsel %vm1111_vm11, %v1122_v8, %v1123_v42 }
  0xbd   : > { %v1224_v58 = vmul.f32 %v2891_v5, %v1204_v38  ;;  %v1262_v59 = vunpack.c.l.bf16 %v1254_v46  ;;  %v1278_v60 = vmul.f32 %v2894_v6, %v1204_v38  ;;  %v1925_v61 = vpack.c.bf16 %v1915_v51, %v1914_v47  ;;  %v908_v51 = vld [vmem:[#allocation2 + $0x50] sm:$0x1] }
  0xbe   : > { %v1172_v62 = vadd.f32 %v1124_v57, %v1031_v50  ;;  %v1173_v9 = vadd.f32 %v1126_v53, %v1032_v52  ;;  %v1225_v10 = vmul.f32 %v2891_v5, %v1205_v54  ;;  %v1279_v11 = vmul.f32 %v2894_v6, %v1205_v54  ;;  %v1049_v57 = vld [vmem:[#allocation2 + $0x48] sm:$0xe] }
  0xbf   : > { %v1280_v12 = vmul.f32 %v2894_v6, %v1262_v59  ;;  %v1330_v15 = vrot.slane %v1278_v60, 1  ;;  %v1402_v16 = vunpack.c.l.bf16 %v1394_v55  ;;  %2469 = vmatmul.mubr.msk.bf16.vlgmr.msra.gmra.mxu1 %vm1936_vm12, %v1925_v61  ;;  %v1419_v43 = vmul.f32 %v2897_v7, %v1205_v54 }
  0xc0   : > { %v1240_v18 = vadd.f32 %v1224_v58, %v1172_v62  ;;  %v1241_v19 = vadd.f32 %v1225_v10, %v1173_v9  ;;  %v1420_v20 = vmul.f32 %v2897_v7, %v1262_v59  ;;  %v1331_v21 = vrot.slane %v1279_v11, 1 }
  0xc1   : > { %v1333_v22 = vrot.slane %v1280_v12, 1  ;;  %v1418_v23 = vmul.f32 %v2897_v7, %v1402_v16  ;;  %v1573_v48 = vmul.f32 %v2945_v14, %v2930_v45  ;;  %v1471_v24 = vrot.slane %v1419_v43, 2 }
  0xc2   : > { %v1473_v26 = vrot.slane %v1420_v20, 2  ;;  %v1574_v27 = vmul.f32 %v2954_v25, %v2930_v45  ;;  %v1611_v28 = vunpack.c.l.bf16 %v1603_v17  ;;  %v1332_v30 = vsel %vm970_vm10, %v1330_v15, %v1331_v21  ;;  %v1196_v17 = vld [vmem:[#allocation2 + $0x54] sm:$0xff]  }
  0xc3   : > { %v1334_v31 = vsel %vm970_vm10, %v1331_v21, %v1333_v22  ;;  %v1470_v32 = vrot.slane %v1418_v23, 2  ;;  %v1627_v63 = vmul.f32 %v2945_v14, %v2943_v13  ;;  %v1380_v33 = vadd.f32 %v1332_v30, %v1240_v18 }
  0xc4   : > { %v1381_v0 = vadd.f32 %v1334_v31, %v1241_v19  ;;  %v1474_v34 = vsel %vm1111_vm11, %v1471_v24, %v1473_v26  ;;  %v1628_v35 = vmul.f32 %v2954_v25, %v2943_v13  ;;  %v1629_v38 = vmul.f32 %v2943_v13, %v1611_v28 }
  0xc5   : > { %v1472_v37 = vsel %vm1111_vm11, %v1470_v32, %v1471_v24  ;;  %v1679_v40 = vrot.slane %v1627_v63, 1  ;;  %v1751_v56 = vunpack.c.l.bf16 %v1743_v29  ;;  %v1768_v47 = vmul.f32 %v2954_v25, %v2925_v41  ;;  %v1258_v32 = vld [vmem:[#allocation2 + $0x5c] sm:$0x1] }
  0xc6   : > { %v1520_v42 = vadd.f32 %v1472_v37, %v1380_v33  ;;  %v1521_v44 = vadd.f32 %v1474_v34, %v1381_v0  ;;  %v1680_v46 = vrot.slane %v1628_v35, 1  ;;  %v1682_v14 = vrot.slane %v1629_v38, 1 }
  0xc7   : > { %v1767_v49 = vmul.f32 %v2925_v41, %v1751_v56  ;;  %v1769_v50 = vmul.f32 %v2925_v41, %v1611_v28  ;;  %v882_v8 = vmul.f32 %v2992_v36, %v2882_v2  ;;  %v1820_v55 = vrot.slane %v1768_v47, 2 }
  0xc8   : > { %v1589_v52 = vadd.f32 %v1573_v48, %v1520_v42  ;;  %v1590_v53 = vadd.f32 %v1574_v27, %v1521_v44  ;;  %v1681_v54 = vsel %vm970_vm10, %v1679_v40, %v1680_v46  ;;  %v1683_v58 = vsel %vm970_vm10, %v1680_v46, %v1682_v14  ;;  %v1398_v40 = vld [vmem:[#allocation2 + $0x54] sm:$0xe] }
  0xc9   : > { %v1819_v59 = vrot.slane %v1767_v49, 2  ;;  %v1822_v60 = vrot.slane %v1769_v50, 2  ;;  %v883_v25 = vmul.f32 %v2994_v39, %v2882_v2  ;;  %v916_v9 = vunpack.c.l.bf16 %v908_v51 }
  0xca   : > { %v1729_v61 = vadd.f32 %v1681_v54, %v1589_v52  ;;  %v1730_v62 = vadd.f32 %v1683_v58, %v1590_v53  ;;  %v940_v10 = vmul.f32 %v2992_v36, %v2885_v3  ;;  %v941_v15 = vmul.f32 %v2994_v39, %v2885_v3 }
  0xcb   : > { %v1821_v11 = vsel %vm1111_vm11, %v1819_v59, %v1820_v55  ;;  %v1823_v12 = vsel %vm1111_vm11, %v1820_v55, %v1822_v60  ;;  %v1057_v16 = vunpack.c.l.bf16 %v1049_v57  ;;  %v942_v43 = vmul.f32 %v2885_v3, %v916_v9  ;;  %v1607_v55 = vld [vmem:[#allocation2 + $0x68] sm:$0x1] }
  0xcc   : > { %v1869_v18 = vadd.f32 %v1821_v11, %v1729_v61  ;;  %v1870_v19 = vadd.f32 %v1823_v12, %v1730_v62  ;;  %v1001_v20 = vrot.slane %v940_v10, 1  ;;  %v1002_v21 = vrot.slane %v941_v15, 1 }
  0xcd   : > { %v1081_v22 = vmul.f32 %v2888_v4, %v1057_v16  ;;  %v1082_v36 = vmul.f32 %v2994_v39, %v2888_v4  ;;  %v1083_v23 = vmul.f32 %v2888_v4, %v916_v9  ;;  %v1004_v26 = vrot.slane %v942_v43, 1  ;;  %v1747_v16 = vld [vmem:[#allocation2 + $0x60] sm:$0xe] }
  0xce   : > { %v1892_v48 = vadd.f32 %v2971_v1, %v1869_v18  ;;  %v1893_v24 = vadd.f32 %v2971_v1, %v1870_v19  ;;  %v1212_v27 = vunpack.c.l.bf16 %v1196_v17  ;;  %v1003_v28 = vsel %vm970_vm10, %v1001_v20, %v1002_v21 }
  0xcf   : > { %v1142_v29 = vrot.slane %v1081_v22, 2  ;;  %v1143_v30 = vrot.slane %v1082_v36, 2  ;;  %v1145_v31 = vrot.slane %v1083_v23, 2  ;;  %v1005_v0 = vsel %vm970_vm10, %v1002_v21, %v1004_v26 }
  0xd0   : > { %v1908_v63 = vmax.f32 %v1892_v48, 0.0  ;;  %v1909_v33 = vmax.f32 %v1893_v24, 0.0  ;;  %v1039_v34 = vadd.f32 %v1003_v28, %v882_v8  ;;  %v1040_v39 = vadd.f32 %v1005_v0, %v883_v25  ;;  %v2448_v8 = vld [vmem:[#allocation2 + $0x60] sm:$0xff]  }
  0xd1   : > { %v1144_v35 = vsel %vm1111_vm11, %v1142_v29, %v1143_v30  ;;  %v1146_v37 = vsel %vm1111_vm11, %v1143_v30, %v1145_v31  ;;  %v1213_v38 = vunpack.c.h.bf16 %v1196_v17  ;;  %v1232_v44 = vmul.f32 %v2891_v5, %v1212_v27 }
  0xd2   : > { %v1922_v56 = vpack.c.bf16 %v1909_v33, %v1908_v63  ;;  %v1180_v42 = vadd.f32 %v1144_v35, %v1039_v34  ;;  %v1266_v46 = vunpack.c.l.bf16 %v1258_v32  ;;  %v1181_v47 = vadd.f32 %v1146_v37, %v1040_v39 }
  0xd3   : > { %v1233_v14 = vmul.f32 %v2891_v5, %v1213_v38  ;;  %v1290_v49 = vmul.f32 %v2894_v6, %v1212_v27  ;;  %v1291_v50 = vmul.f32 %v2894_v6, %v1213_v38  ;;  %v1406_v53 = vunpack.c.l.bf16 %v1398_v40  ;;  %v840_v27 = vld [vmem:[#allocation2 + $0x24] sm:$0xff]  }
  0xd4   : > { %2464 = vmatprep.mubr.msk.bf16.mxu0 %vm1936_vm12, %v1922_v56  ;;  %v1248_v51 = vadd.f32 %v1232_v44, %v1180_v42  ;;  %v1292_v52 = vmul.f32 %v2894_v6, %v1266_v46  ;;  %v1431_v54 = vmul.f32 %v2897_v7, %v1213_v38  ;;  %v1432_v60 = vmul.f32 %v2897_v7, %v1266_v46  ;;  %v905_v38 = vld [vmem:[#allocation2 + $0x2c] sm:$0x1] }
  0xd5   : > { %v1249_v57 = vadd.f32 %v1233_v14, %v1181_v47  ;;  %v1350_v58 = vrot.slane %v1290_v49, 1  ;;  %v1351_v59 = vrot.slane %v1291_v50, 1  ;;  %v1430_v61 = vmul.f32 %v2897_v7, %v1406_v53  ;;  %v1046_v50 = vld [vmem:[#allocation2 + $0x24] sm:$0xe] }
  0xd6   : > { %v1353_v25 = vrot.slane %v1292_v52, 1  ;;  %v1491_v62 = vrot.slane %v1431_v54, 2  ;;  %v3182_v9 = vunpack.c.l.bf16 %v2448_v8  ;;  %v1493_v11 = vrot.slane %v1432_v60, 2 }
  0xd7   : > { %v1352_v10 = vsel %vm970_vm10, %v1350_v58, %v1351_v59  ;;  %v3185_v12 = vunpack.c.h.bf16 %v2448_v8  ;;  %v1615_v15 = vunpack.c.l.bf16 %v1607_v55  ;;  %v1490_v19 = vrot.slane %v1430_v61, 2  ;;  %v2443_v58 = vld [vmem:[#allocation2 + $0x30] sm:$0xff]  }
  0xd8   : > { %v1354_v17 = vsel %vm970_vm10, %v1351_v59, %v1353_v25  ;;  %v1388_v18 = vadd.f32 %v1352_v10, %v1248_v51  ;;  %v1581_v43 = vmul.f32 %v3182_v9, %v2930_v45  ;;  %v1494_v21 = vsel %vm1111_vm11, %v1491_v62, %v1493_v11 }
  0xd9   : > { %v1389_v20 = vadd.f32 %v1354_v17, %v1249_v57  ;;  %v1582_v22 = vmul.f32 %v3185_v12, %v2930_v45  ;;  %v1639_v36 = vmul.f32 %v3182_v9, %v2943_v13  ;;  %v1492_v23 = vsel %vm1111_vm11, %v1490_v19, %v1491_v62 }
  0xda   : > { %v1640_v48 = vmul.f32 %v3185_v12, %v2943_v13  ;;  %v1641_v24 = vmul.f32 %v2943_v13, %v1615_v15  ;;  %v1755_v26 = vunpack.c.l.bf16 %v1747_v16  ;;  %v1528_v28 = vadd.f32 %v1492_v23, %v1388_v18 }
  0xdb   : > { %v1529_v29 = vadd.f32 %v1494_v21, %v1389_v20  ;;  %v1699_v30 = vrot.slane %v1639_v36, 1  ;;  %v1780_v31 = vmul.f32 %v3185_v12, %v2925_v41  ;;  %v1781_v0 = vmul.f32 %v2925_v41, %v1615_v15  ;;  %v1255_v36 = vld [vmem:[#allocation2 + $0x38] sm:$0x1] }
  0xdc   : > { %v1700_v32 = vrot.slane %v1640_v48, 1  ;;  %v1702_v63 = vrot.slane %v1641_v24, 1  ;;  %v1779_v33 = vmul.f32 %v2925_v41, %v1755_v26  ;;  %v1597_v34 = vadd.f32 %v1581_v43, %v1528_v28 }
  0xdd   : > { %v1598_v39 = vadd.f32 %v1582_v22, %v1529_v29  ;;  %v1840_v35 = vrot.slane %v1780_v31, 2  ;;  %v856_v37 = vunpack.c.l.bf16 %v840_v27  ;;  %v1842_v44 = vrot.slane %v1781_v0, 2 }
  0xde   : > { %v1701_v40 = vsel %vm970_vm10, %v1699_v30, %v1700_v32  ;;  %v1703_v56 = vsel %vm970_vm10, %v1700_v32, %v1702_v63  ;;  %v1839_v42 = vrot.slane %v1779_v33, 2  ;;  %v857_v14 = vunpack.c.h.bf16 %v840_v27 }
  0xdf   : > { %v1737_v46 = vadd.f32 %v1701_v40, %v1597_v34  ;;  %v1738_v47 = vadd.f32 %v1703_v56, %v1598_v39  ;;  %v876_v49 = vmul.f32 %v2882_v2, %v856_v37  ;;  %v1843_v41 = vsel %vm1111_vm11, %v1840_v35, %v1842_v44  ;;  %v1604_v44 = vld [vmem:[#allocation2 + $0x44] sm:$0x1] }
  0xe0   : > { %v1841_v8 = vsel %vm1111_vm11, %v1839_v42, %v1840_v35  ;;  %v913_v51 = vunpack.c.l.bf16 %v905_v38  ;;  %v931_v52 = vmul.f32 %v2885_v3, %v856_v37  ;;  %v877_v55 = vmul.f32 %v2882_v2, %v857_v14  ;;  %v1539_v37 = vld [vmem:[#allocation2 + $0x3c] sm:$0xff]  }
  0xe1   : > { %v1877_v53 = vadd.f32 %v1841_v8, %v1737_v46  ;;  %v1878_v54 = vadd.f32 %v1843_v41, %v1738_v47  ;;  %v932_v57 = vmul.f32 %v2885_v3, %v857_v14  ;;  %v1054_v25 = vunpack.c.l.bf16 %v1046_v50 }
  0xe2   : > { %v933_v59 = vmul.f32 %v2885_v3, %v913_v51  ;;  %v986_v60 = vrot.slane %v931_v52, 1  ;;  %v1073_v61 = vmul.f32 %v2888_v4, %v857_v14  ;;  %v1074_v15 = vmul.f32 %v2888_v4, %v913_v51 }
  0xe3   : > { %v1900_v62 = vadd.f32 %v2971_v1, %v1877_v53  ;;  %v1901_v10 = vadd.f32 %v2971_v1, %v1878_v54  ;;  %v987_v11 = vrot.slane %v932_v57, 1  ;;  %v1072_v17 = vmul.f32 %v2888_v4, %v1054_v25  ;;  %v1395_v1 = vld [vmem:[#allocation2 + $0x30] sm:$0xe]  ;;  %v1744_v57 = vld [vmem:[#allocation2 + $0x3c] sm:$0xe] }
  0xe4   : > { %v989_v16 = vrot.slane %v933_v59, 1  ;;  %v1128_v18 = vrot.slane %v1073_v61, 2  ;;  %v2413_v19 = vunpack.c.l.bf16 %v2443_v58  ;;  %v1130_v22 = vrot.slane %v1074_v15, 2 }
  0xe5   : > { %v1916_v43 = vmax.f32 %v1900_v62, 0.0  ;;  %v1917_v20 = vmax.f32 %v1901_v10, 0.0  ;;  %v988_v21 = vsel %vm970_vm10, %v986_v60, %v987_v11  ;;  %v1127_v24 = vrot.slane %v1072_v17, 2 }
  0xe6   : > { %v990_v23 = vsel %vm970_vm10, %v987_v11, %v989_v16  ;;  %v1033_v48 = vadd.f32 %v988_v21, %v876_v49  ;;  %v2414_v26 = vunpack.c.h.bf16 %v2443_v58  ;;  %v1131_v29 = vsel %vm1111_vm11, %v1128_v18, %v1130_v22  ;;  %v3242_v21 = vld [vmem:[%s3374_s3 + $0x8] ss:$0 sm:$0xff] }
  0xe7   : > { %v1926_v27 = vpack.c.bf16 %v1917_v20, %v1916_v43  ;;  %v1034_v28 = vadd.f32 %v990_v23, %v877_v55  ;;  %v1226_v30 = vmul.f32 %v2413_v19, %v2891_v5  ;;  %v1129_v31 = vsel %vm1111_vm11, %v1127_v24, %v1128_v18 }
  0xe8   : > { %v1227_v32 = vmul.f32 %v2414_v26, %v2891_v5  ;;  %v1263_v63 = vunpack.c.l.bf16 %v1255_v36  ;;  %v1281_v33 = vmul.f32 %v2413_v19, %v2894_v6  ;;  %v1174_v0 = vadd.f32 %v1129_v31, %v1033_v48  ;;  %v848_v19 = vld [vmem:[#allocation2 + $0x54] sm:$0xff]  }
  0xe9   : > { %2472 = vmatprep.mubr.msk.bf16.mxu1 %vm1936_vm12, %v1926_v27  ;;  %v1175_v34 = vadd.f32 %v1131_v29, %v1034_v28  ;;  %v1282_v39 = vmul.f32 %v2414_v26, %v2894_v6  ;;  %v1403_v35 = vunpack.c.l.bf16 %v1395_v1  ;;  %v1422_v56 = vmul.f32 %v2414_v26, %v2897_v7 }
  0xea   : > { %v1283_v38 = vmul.f32 %v2894_v6, %v1263_v63  ;;  %v1335_v40 = vrot.slane %v1281_v33, 1  ;;  %v1423_v42 = vmul.f32 %v2897_v7, %v1263_v63  ;;  %v1242_v46 = vadd.f32 %v1226_v30, %v1174_v0  ;;  %v909_v30 = vld [vmem:[#allocation2 + $0x5c] sm:$0x1]  ;;  %v1050_v0 = vld [vmem:[#allocation2 + $0x54] sm:$0xe] }
  0xeb   : > { %v1243_v47 = vadd.f32 %v1227_v32, %v1175_v34  ;;  %v1336_v14 = vrot.slane %v1282_v39, 1  ;;  %v1421_v49 = vmul.f32 %v2897_v7, %v1403_v35  ;;  %v1476_v8 = vrot.slane %v1422_v56, 2 }
  0xec   : > { %v1338_v50 = vrot.slane %v1283_v38, 1  ;;  %v1478_v41 = vrot.slane %v1423_v42, 2  ;;  %v1555_v51 = vunpack.c.l.bf16 %v1539_v37  ;;  %v1556_v54 = vunpack.c.h.bf16 %v1539_v37 }
  0xed   : > { %v1337_v52 = vsel %vm970_vm10, %v1335_v40, %v1336_v14  ;;  %v1475_v53 = vrot.slane %v1421_v49, 2  ;;  %v1612_v55 = vunpack.c.l.bf16 %v1604_v44  ;;  %v1752_v18 = vunpack.c.l.bf16 %v1744_v57 }
  0xee   : > { %v1339_v58 = vsel %vm970_vm10, %v1336_v14, %v1338_v50  ;;  %v1382_v59 = vadd.f32 %v1337_v52, %v1242_v46  ;;  %v1479_v60 = vsel %vm1111_vm11, %v1476_v8, %v1478_v41  ;;  %v1575_v25 = vmul.f32 %v2930_v45, %v1555_v51 }
  0xef   : > { %v1383_v61 = vadd.f32 %v1339_v58, %v1243_v47  ;;  %v1477_v62 = vsel %vm1111_vm11, %v1475_v53, %v1476_v8  ;;  %v1576_v10 = vmul.f32 %v2930_v45, %v1556_v54  ;;  %v1630_v11 = vmul.f32 %v2943_v13, %v1555_v51  ;;  %v3261_v51 = vld [vmem:[%s3376_s5] ss:$0 sm:$0xff] }
  0xf0   : > { %v1522_v15 = vadd.f32 %v1477_v62, %v1382_v59  ;;  %v1631_v16 = vmul.f32 %v2943_v13, %v1556_v54  ;;  %v1632_v17 = vmul.f32 %v2943_v13, %v1612_v55  ;;  %v1771_v22 = vmul.f32 %v3242_v21, %v1556_v54  ;;  %v1259_v59 = vld [vmem:[#allocation2 + $0x68] sm:$0x1] }
  0xf1   : > { %v1523_v43 = vadd.f32 %v1479_v60, %v1383_v61  ;;  %v1684_v20 = vrot.slane %v1630_v11, 1  ;;  %v1772_v36 = vmul.f32 %v3242_v21, %v1612_v55  ;;  %v1770_v26 = vmul.f32 %v3242_v21, %v1752_v18 }
  0xf2   : > { %v1591_v23 = vadd.f32 %v1575_v25, %v1522_v15  ;;  %v1685_v48 = vrot.slane %v1631_v16, 1  ;;  %v1687_v24 = vrot.slane %v1632_v17, 1  ;;  %v1825_v27 = vrot.slane %v1771_v22, 2 }
  0xf3   : > { %v1592_v1 = vadd.f32 %v1576_v10, %v1523_v43  ;;  %v1827_v28 = vrot.slane %v1772_v36, 2  ;;  %v864_v29 = vunpack.c.l.bf16 %v848_v19  ;;  %v1824_v63 = vrot.slane %v1770_v26, 2  ;;  %v1399_v10 = vld [vmem:[#allocation2 + $0x60] sm:$0xe] }
  0xf4   : > { %v1686_v31 = vsel %vm970_vm10, %v1684_v20, %v1685_v48  ;;  %v1688_v32 = vsel %vm970_vm10, %v1685_v48, %v1687_v24  ;;  %v865_v33 = vunpack.c.h.bf16 %v848_v19  ;;  %v917_v56 = vunpack.c.l.bf16 %v909_v30  ;;  %v1608_v30 = vld [vmem:[#allocation2 + $0x74] sm:$0x1] }
  0xf5   : > { %v1731_v34 = vadd.f32 %v1686_v31, %v1591_v23  ;;  %v1732_v39 = vadd.f32 %v1688_v32, %v1592_v1  ;;  %v1828_v35 = vsel %vm1111_vm11, %v1825_v27, %v1827_v28  ;;  %v884_v37 = vmul.f32 %v2882_v2, %v864_v29  ;;  %v1547_v1 = vld [vmem:[#allocation2 + $0x6c] sm:$0xff]  }
  0xf6   : > { %v1826_v38 = vsel %vm1111_vm11, %v1824_v63, %v1825_v27  ;;  %v885_v40 = vmul.f32 %v2882_v2, %v865_v33  ;;  %v943_v42 = vmul.f32 %v2885_v3, %v864_v29  ;;  %v944_v47 = vmul.f32 %v2885_v3, %v865_v33 }
  0xf7   : > { %v1871_v44 = vadd.f32 %v1826_v38, %v1731_v34  ;;  %v1872_v46 = vadd.f32 %v1828_v35, %v1732_v39  ;;  %v1058_v14 = vunpack.c.l.bf16 %v1050_v0  ;;  %v945_v49 = vmul.f32 %v2885_v3, %v917_v56 }
  0xf8   : > { %v1006_v50 = vrot.slane %v943_v42, 1  ;;  %v1085_v8 = vmul.f32 %v2888_v4, %v865_v33  ;;  %v1086_v41 = vmul.f32 %v2888_v4, %v917_v56  ;;  %v1007_v53 = vrot.slane %v944_v47, 1 }
  0xf9   : > { %v1894_v2 = vadd.f32 %v3261_v51, %v1871_v44  ;;  %v1895_v52 = vadd.f32 %v3261_v51, %v1872_v46  ;;  %v1084_v54 = vmul.f32 %v2888_v4, %v1058_v14  ;;  %v1009_v55 = vrot.slane %v945_v49, 1 }
  0xfa   : > { %v1148_v57 = vrot.slane %v1085_v8, 2  ;;  %v1150_v3 = vrot.slane %v1086_v41, 2  ;;  %v1234_v58 = vmul.f32 %v3182_v9, %v2891_v5  ;;  %v1008_v61 = vsel %vm970_vm10, %v1006_v50, %v1007_v53 }
  0xfb   : > { %v1910_v60 = vmax.f32 %v1894_v2, 0.0  ;;  %v1911_v25 = vmax.f32 %v1895_v52, 0.0  ;;  %v1147_v62 = vrot.slane %v1084_v54, 2  ;;  %v1010_v11 = vsel %vm970_vm10, %v1007_v53, %v1009_v55 }
  0xfc   : > { %v1041_v15 = vadd.f32 %v1008_v61, %v884_v37  ;;  %v1151_v16 = vsel %vm1111_vm11, %v1148_v57, %v1150_v3  ;;  %v1235_v4 = vmul.f32 %v3185_v12, %v2891_v5  ;;  %v1042_v18 = vadd.f32 %v1010_v11, %v885_v40  ;;  %v1748_v40 = vld [vmem:[#allocation2 + $0x6c] sm:$0xe] }
  0xfd   : > { %v1923_v17 = vpack.c.bf16 %v1911_v25, %v1910_v60  ;;  %v1149_v19 = vsel %vm1111_vm11, %v1147_v62, %v1148_v57  ;;  %v1267_v43 = vunpack.c.l.bf16 %v1259_v59  ;;  %v1293_v22 = vmul.f32 %v3182_v9, %v2894_v6 }
  0xfe   : > { %v1182_v20 = vadd.f32 %v1149_v19, %v1041_v15  ;;  %v1294_v36 = vmul.f32 %v3185_v12, %v2894_v6  ;;  %v1407_v23 = vunpack.c.l.bf16 %v1399_v10  ;;  %v1183_v48 = vadd.f32 %v1151_v16, %v1042_v18  ;;  %v3306_v19 = vld [vmem:[%s3377_s6] ss:$0 sm:$0xff] }
  0xff   : > { %2465 = vmatmul.mubr.msk.bf16.gmra.mxu0 %vm1936_vm12, %v1923_v17  ;;  %v1295_v24 = vmul.f32 %v2894_v6, %v1267_v43  ;;  %v1434_v5 = vmul.f32 %v3185_v12, %v2897_v7  ;;  %v1435_v26 = vmul.f32 %v2897_v7, %v1267_v43  ;;  %v1355_v28 = vrot.slane %v1293_v22, 1 }
 0x100   : > { %v1250_v27 = vadd.f32 %v1234_v58, %v1182_v20  ;;  %v1356_v29 = vrot.slane %v1294_v36, 1  ;;  %v1433_v9 = vmul.f32 %v2897_v7, %v1407_v23  ;;  %v1251_v31 = vadd.f32 %v1235_v4, %v1183_v48 }
 0x101   : > { %v1358_v32 = vrot.slane %v1295_v24, 1  ;;  %v1496_v63 = vrot.slane %v1434_v5, 2  ;;  %v1498_v33 = vrot.slane %v1435_v26, 2  ;;  %v1563_v6 = vunpack.c.l.bf16 %v1547_v1 }
 0x102   : > { %v1357_v0 = vsel %vm970_vm10, %v1355_v28, %v1356_v29  ;;  %v1495_v34 = vrot.slane %v1433_v9, 2  ;;  %v1564_v39 = vunpack.c.h.bf16 %v1547_v1  ;;  %v1616_v38 = vunpack.c.l.bf16 %v1608_v30 }
 0x103   : > { %v1359_v12 = vsel %vm970_vm10, %v1356_v29, %v1358_v32  ;;  %v1390_v35 = vadd.f32 %v1357_v0, %v1250_v27  ;;  %v1499_v37 = vsel %vm1111_vm11, %v1496_v63, %v1498_v33  ;;  %v1583_v42 = vmul.f32 %v2930_v45, %v1563_v6 }
 0x104   : > { %v1391_v56 = vadd.f32 %v1359_v12, %v1251_v31  ;;  %v1497_v7 = vsel %vm1111_vm11, %v1495_v34, %v1496_v63  ;;  %v1584_v44 = vmul.f32 %v2930_v45, %v1564_v39  ;;  %v1642_v47 = vmul.f32 %v2943_v13, %v1563_v6 }
 0x105   : > { %v1530_v46 = vadd.f32 %v1497_v7, %v1390_v35  ;;  %v1643_v14 = vmul.f32 %v2943_v13, %v1564_v39  ;;  %v1644_v49 = vmul.f32 %v2943_v13, %v1616_v38  ;;  %v1756_v8 = vunpack.c.l.bf16 %v1748_v40 }
 0x106   : > { %v1531_v50 = vadd.f32 %v1499_v37, %v1391_v56  ;;  %v1783_v41 = vmul.f32 %v3242_v21, %v1564_v39  ;;  %v1784_v2 = vmul.f32 %v3242_v21, %v1616_v38  ;;  %v1704_v53 = vrot.slane %v1642_v47, 1 }
 0x107   : > { %v1599_v52 = vadd.f32 %v1583_v42, %v1530_v46  ;;  %v1705_v54 = vrot.slane %v1643_v14, 1  ;;  %v1707_v55 = vrot.slane %v1644_v49, 1  ;;  %v1782_v45 = vmul.f32 %v3242_v21, %v1756_v8 }
 0x108   : > { %v1600_v57 = vadd.f32 %v1584_v44, %v1531_v50  ;;  %v1845_v3 = vrot.slane %v1783_v41, 2  ;;  %v1847_v58 = vrot.slane %v1784_v2, 2  ;;  %vm2142_vm13 = vcmask 60416  }
 0x109   : > { %v1706_v59 = vsel %vm970_vm10, %v1704_v53, %v1705_v54  ;;  %v1708_v60 = vsel %vm970_vm10, %v1705_v54, %v1707_v55  ;;  %v1844_v61 = vrot.slane %v1782_v45, 2 }
 0x10a   : > { %v1739_v13 = vadd.f32 %v1706_v59, %v1599_v52  ;;  %v1740_v25 = vadd.f32 %v1708_v60, %v1600_v57  ;;  %v1848_v62 = vsel %vm1111_vm11, %v1845_v3, %v1847_v58 }
 0x10b   : > { %v1846_v10 = vsel %vm1111_vm11, %v1844_v61, %v1845_v3 }
 0x10c   : > { %v1880_v11 = vadd.f32 %v1848_v62, %v1740_v25  ;;  %v1879_v15 = vadd.f32 %v1846_v10, %v1739_v13 }
 0x10e   : > { %v1903_v16 = vadd.f32 %v3261_v51, %v1880_v11  ;;  %v1902_v4 = vadd.f32 %v3261_v51, %v1879_v15 }
 0x110   : > { %v1919_v21 = vmax.f32 %v1903_v16, 0.0  ;;  %v1918_v17 = vmax.f32 %v1902_v4, 0.0 }
 0x112   : > { %v1927_v18 = vpack.c.bf16 %v1919_v21, %v1918_v17 }
 0x114   : > { %2473 = vmatmul.mubr.msk.bf16.gmra.mxu1 %vm1936_vm12, %v1927_v18 }
 0x16b   : > { %v2462_v43 = vpop.f32.mrf.mxu0 }
 0x16c   : > { %v2008_v20 = vadd.f32 %v2462_v43, %v3306_v19 }
 0x16d   : > { %v1999_v22 = vpop.f32.mrf.mxu0 }
 0x16e   : > { %v2064_v36 = vmax.f32 %v2008_v20, 0.0  ;;  %v2000_v51 = vadd.f32 %v3306_v19, %v1999_v22 }
 0x16f   : > { %v2463_v23 = vpop.f32.mrf.mxu0 }
 0x170   : > { %v2377_v48 = vpack.c.bf16 %v2064_v36, %v2064_v36  ;;  %v2062_v24 = vmax.f32 %v2000_v51, 0.0  ;;  %v2011_v5 = vadd.f32 %v2463_v23, %v3306_v19 }
 0x171   : > { %v2002_v26 = vpop.f32.mrf.mxu0 }
 0x172   : > { %2145 = vst.msk [vmem:[%s2716_s20 + $0x8] sm:$0xf] %vm2142_vm13, %v2377_v48  ;;  %v2375_v1 = vpack.c.bf16 %v2062_v24, %v2062_v24  ;;  %v2065_v27 = vmax.f32 %v2011_v5, 0.0  ;;  %v2003_v28 = vadd.f32 %v3306_v19, %v2002_v26 }
 0x174   : > { %2143 = vst.msk [vmem:[%s2716_s20] sm:$0xf] %vm2142_vm13, %v2375_v1  ;;  %v2378_v29 = vpack.c.bf16 %v2065_v27, %v2065_v27  ;;  %v2063_v9 = vmax.f32 %v2003_v28, 0.0 }
 0x176   : > { %2146 = vst.msk [vmem:[%s2716_s20 + $0xc] sm:$0xf] %vm2142_vm13, %v2378_v29  ;;  %v2376_v30 = vpack.c.bf16 %v2063_v9, %v2063_v9 }
 0x178   : > { %2144 = vst.msk [vmem:[%s2716_s20 + $0x4] sm:$0xf] %vm2142_vm13, %v2376_v30 }
 0x17f   : > { %v2470_v31 = vpop.f32.mrf.mxu1 }
 0x180   : > { %v2040_v32 = vadd.f32 %v2470_v31, %v3306_v19 }
 0x181   : > { %v2031_v63 = vpop.f32.mrf.mxu1 }
 0x182   : > { %v2072_v33 = vmax.f32 %v2040_v32, 0.0  ;;  %v2032_v0 = vadd.f32 %v3306_v19, %v2031_v63 }
 0x183   : > { %v2471_v34 = vpop.f32.mrf.mxu1 }
 0x184   : > { %v2385_v6 = vpack.c.bf16 %v2072_v33, %v2072_v33  ;;  %v2070_v39 = vmax.f32 %v2032_v0, 0.0  ;;  %v2043_v12 = vadd.f32 %v2471_v34, %v3306_v19 }
 0x185   : > { %v2034_v35 = vpop.f32.mrf.mxu1 }
 0x186   : > { %2153 = vst.msk [vmem:[%s2716_s20 + $0x28] sm:$0xf] %vm2142_vm13, %v2385_v6  ;;  %v2383_v37 = vpack.c.bf16 %v2070_v39, %v2070_v39  ;;  %v2073_v38 = vmax.f32 %v2043_v12, 0.0  ;;  %v2035_v40 = vadd.f32 %v3306_v19, %v2034_v35 }
 0x188   : > { %2151 = vst.msk [vmem:[%s2716_s20 + $0x20] sm:$0xf] %vm2142_vm13, %v2383_v37  ;;  %v2386_v56 = vpack.c.bf16 %v2073_v38, %v2073_v38  ;;  %v2071_v7 = vmax.f32 %v2035_v40, 0.0 }
 0x18a   : > { %2154 = vst.msk [vmem:[%s2716_s20 + $0x2c] sm:$0xf] %vm2142_vm13, %v2386_v56  ;;  %v2384_v42 = vpack.c.bf16 %v2071_v7, %v2071_v7 }
 0x18c   : > { %2152 = vst.msk [vmem:[%s2716_s20 + $0x24] sm:$0xf] %vm2142_vm13, %v2384_v42 }
 0x1bf   : > { %v2466_v44 = vpop.f32.mrf.mxu0 }
 0x1c0   : > { %v2024_v46 = vadd.f32 %v2466_v44, %v3306_v19 }
 0x1c1   : > { %v2015_v47 = vpop.f32.mrf.mxu0 }
 0x1c2   : > { %v2068_v14 = vmax.f32 %v2024_v46, 0.0  ;;  %v2016_v49 = vadd.f32 %v3306_v19, %v2015_v47 }
 0x1c3   : > { %v2467_v50 = vpop.f32.mrf.mxu0 }
 0x1c4   : > { %v2381_v8 = vpack.c.bf16 %v2068_v14, %v2068_v14  ;;  %v2066_v41 = vmax.f32 %v2016_v49, 0.0  ;;  %v2027_v2 = vadd.f32 %v2467_v50, %v3306_v19 }
 0x1c5   : > { %v2018_v52 = vpop.f32.mrf.mxu0 }
 0x1c6   : > { %2149 = vst.msk [vmem:[%s2716_s20 + $0x18] sm:$0xf] %vm2142_vm13, %v2381_v8  ;;  %v2379_v53 = vpack.c.bf16 %v2066_v41, %v2066_v41  ;;  %v2069_v54 = vmax.f32 %v2027_v2, 0.0  ;;  %v2019_v55 = vadd.f32 %v3306_v19, %v2018_v52 }
 0x1c8   : > { %2147 = vst.msk [vmem:[%s2716_s20 + $0x10] sm:$0xf] %vm2142_vm13, %v2379_v53  ;;  %v2382_v57 = vpack.c.bf16 %v2069_v54, %v2069_v54  ;;  %v2067_v45 = vmax.f32 %v2019_v55, 0.0 }
 0x1ca   : > { %2150 = vst.msk [vmem:[%s2716_s20 + $0x1c] sm:$0xf] %vm2142_vm13, %v2382_v57  ;;  %v2380_v3 = vpack.c.bf16 %v2067_v45, %v2067_v45 }
 0x1cc   : > { %2148 = vst.msk [vmem:[%s2716_s20 + $0x14] sm:$0xf] %vm2142_vm13, %v2380_v3 }
 0x1d4   : > { %v2474_v58 = vpop.f32.mrf.mxu1 }
 0x1d5   : > { %v2056_v59 = vadd.f32 %v2474_v58, %v3306_v19 }
 0x1d6   : > { %v2047_v60 = vpop.f32.mrf.mxu1 }
 0x1d7   : > { %v2076_v13 = vmax.f32 %v2056_v59, 0.0  ;;  %v2048_v25 = vadd.f32 %v3306_v19, %v2047_v60 }
 0x1d8   : > { %v2475_v61 = vpop.f32.mrf.mxu1 }
 0x1d9   : > { %v2389_v62 = vpack.c.bf16 %v2076_v13, %v2076_v13  ;;  %v2074_v10 = vmax.f32 %v2048_v25, 0.0  ;;  %v2059_v11 = vadd.f32 %v2475_v61, %v3306_v19 }
 0x1da   : > { %v2050_v15 = vpop.f32.mrf.mxu1 }
 0x1db   : > { %2157 = vst.msk [vmem:[%s2716_s20 + $0x38] sm:$0xf] %vm2142_vm13, %v2389_v62  ;;  %v2387_v16 = vpack.c.bf16 %v2074_v10, %v2074_v10  ;;  %v2077_v4 = vmax.f32 %v2059_v11, 0.0  ;;  %v2051_v21 = vadd.f32 %v3306_v19, %v2050_v15 }
 0x1dd   : > { %2155 = vst.msk [vmem:[%s2716_s20 + $0x30] sm:$0xf] %vm2142_vm13, %v2387_v16  ;;  %v2390_v17 = vpack.c.bf16 %v2077_v4, %v2077_v4  ;;  %v2075_v18 = vmax.f32 %v2051_v21, 0.0 }
 0x1df   : > { %2158 = vst.msk [vmem:[%s2716_s20 + $0x3c] sm:$0xf] %vm2142_vm13, %v2390_v17  ;;  %v2388_v43 = vpack.c.bf16 %v2075_v18, %v2075_v18 }
 0x1e1   : > { %2156 = vst.msk [vmem:[%s2716_s20 + $0x34] sm:$0xf] %vm2142_vm13, %v2388_v43 }
 0x1e2 PF: > { %s17_s28 = sadd.s32 1, %s2562_s28   ;;  %s3388_s24 = smov %s2554_s26 }
 0x1e3   : > { %p14_p12 = scmp.ge.s32.totalorder %s17_s28, 6   ;;  %s3389_s25 = smov %s2558_s27 }
 0x1e4   : > { %s3390_s26 = smov %s3393_s29  ;;  %s3391_s27 = smov %s3397_s30 }
 0x1e5   :  { %16 = sbr.rel (!%p14_p12) target bundleno = 3 (0x3), region = 95 }

</bundles_post_ra>
